<compile_context>
chip_gen: v7x
topology: tpu7x:2x2x1
jax: 0.10.0
libtpu: 0.0.40
codegen_flags: <defaults>
</compile_context>

<pallas_src>
import functools

import jax
import jax.numpy as jnp
from jax.experimental import pallas as pl
from jax.experimental.pallas import tpu as pltpu

# ----------------------------- configuration --------------------------------
FEATURE_DIM = 2048       # encoder output dim (sizes[0] = 2048)
NUM_HIDDEN = 32          # config.num_hidden
NUM_PROJECTION = 16      # config.num_projection
ENC_FEAT = 8             # channels produced by the stand-in 1x1 conv
BN_EPS = 1e-5

LANE = 128
F_PAD = max(LANE, ENC_FEAT)        # padded stand-in conv width
H_PAD = max(LANE, NUM_HIDDEN)      # padded projector hidden width
P_PAD = max(LANE, NUM_PROJECTION)  # padded (lane-dense) projection width

HW_TILE_TARGET = 128   # spatial rows per pipeline step per sample
                       # (raise to 512-2048 for real image sizes)


# ------------------------------- kernel -------------------------------------
def _bn_train(x, gamma, beta):
    """nn.BatchNorm1d in training mode: batch statistics, biased variance."""
    mu = jnp.mean(x, axis=0, keepdims=True)
    xc = x - mu
    var = jnp.mean(xc * xc, axis=0, keepdims=True)
    return xc * jax.lax.rsqrt(var + BN_EPS) * gamma + beta


def _barlow_kernel(
    x_ref,       # [N, HW_TILE, Cin]   bf16 (one branch, one spatial tile)
    wconv_ref,   # [Cin, F_PAD]        bf16 stand-in 1x1 conv weight
    wfeat_ref,   # [F_PAD, 2048]       bf16 stand-in encoder head
    w1_ref,      # [2048, H_PAD]       bf16 projector Linear 1 (no bias)
    g1_ref,      # [1, H_PAD]          f32 BatchNorm1d gamma
    b1_ref,      # [1, H_PAD]          f32 BatchNorm1d beta
    w2_ref,      # [H_PAD, H_PAD]      bf16 projector Linear 2 (no bias)
    g2_ref,      # [1, H_PAD]          f32
    b2_ref,      # [1, H_PAD]          f32
    w3_ref,      # [H_PAD, P_PAD]      bf16 projector Linear 3 (no bias)
    z_ref,       # [N, P_PAD]          f32 output (resident across HW tiles)
    acc_ref,     # [N, F_PAD]          f32 scratch: pooled-sum accumulator
    *, hw_total,
):
    f32 = jnp.float32
    bf16 = jnp.bfloat16
    t = pl.program_id(1)
    n_t = pl.num_programs(1)

    @pl.when(t == 0)
    def _():
        acc_ref[...] = jnp.zeros_like(acc_ref)

    # --- stand-in encoder body: pointwise conv + ReLU + spatial partial sum --
    x = x_ref[...]                               # [N, S, C] bf16
    n, s, c = x.shape
    h = jnp.dot(x.reshape(n * s, c), wconv_ref[...],
                preferred_element_type=f32)      # [N*S, F_PAD]
    h = jnp.maximum(h, 0.0)
    acc_ref[...] += jnp.sum(h.reshape(n, s, F_PAD), axis=1)   # [N, F_PAD]

    @pl.when(t == n_t - 1)
    def _():
        # Global average pool (zero-padded spatial rows added nothing).
        feat = (acc_ref[...] * (1.0 / hw_total)).astype(bf16)          # [N, F_PAD]
        # Encoder head -> 2048-d representation.
        e = jnp.dot(feat, wfeat_ref[...], preferred_element_type=f32)  # [N, 2048]
        # Projector: Linear -> BN -> ReLU -> Linear -> BN -> ReLU -> Linear.
        h1 = jnp.dot(e.astype(bf16), w1_ref[...], preferred_element_type=f32)
        h1 = jnp.maximum(_bn_train(h1, g1_ref[...], b1_ref[...]), 0.0)
        h2 = jnp.dot(h1.astype(bf16), w2_ref[...], preferred_element_type=f32)
        h2 = jnp.maximum(_bn_train(h2, g2_ref[...], b2_ref[...]), 0.0)
        z = jnp.dot(h2.astype(bf16), w3_ref[...], preferred_element_type=f32)
        z_ref[...] = z.astype(z_ref.dtype)


# ------------------------------- wrapper -------------------------------------
def _round_up(v, m):
    return ((v + m - 1) // m) * m


def _pad_last(a, to):
    pad = to - a.shape[-1]
    return a if pad <= 0 else jnp.pad(a, [(0, 0)] * (a.ndim - 1) + [(0, pad)])


def _pad_axis0(a, to):
    pad = to - a.shape[0]
    return a if pad <= 0 else jnp.pad(a, [(0, pad)] + [(0, 0)] * (a.ndim - 1))


@jax.jit
def barlow_twins_forward(y1, y2, params):
    """forward(y1, y2) -> (z1, z2); both branches share weights and one kernel."""
    n, c, hgt, wid = y1.shape
    hw = hgt * wid

    # One NCHW->NHWC transpose for the fused 2-branch batch: [2, N, HW, C].
    x = jnp.stack([y1, y2], axis=0)
    x = jnp.transpose(x, (0, 1, 3, 4, 2)).reshape(2, n, hw, c).astype(jnp.bfloat16)

    hw_tile = min(HW_TILE_TARGET, _round_up(hw, 8))
    hw_pad = _round_up(hw, hw_tile)
    if hw_pad != hw:
        # Zero spatial rows: ReLU(0 @ wconv) = 0, so the pooled sum is unchanged.
        x = jnp.pad(x, ((0, 0), (0, 0), (0, hw_pad - hw), (0, 0)))
    n_tiles = hw_pad // hw_tile

    # Zero-pad feature dims to 128 lanes once; bf16 for MXU operands,
    # BN affine params stay f32.
    wconv = _pad_last(params["wconv"], F_PAD).astype(jnp.bfloat16)
    wfeat = _pad_axis0(params["wfeat"], F_PAD).astype(jnp.bfloat16)
    w1 = _pad_last(params["w1"], H_PAD).astype(jnp.bfloat16)
    g1 = _pad_last(params["g1"], H_PAD)
    b1 = _pad_last(params["b1"], H_PAD)
    w2 = _pad_last(_pad_axis0(params["w2"], H_PAD), H_PAD).astype(jnp.bfloat16)
    g2 = _pad_last(params["g2"], H_PAD)
    b2 = _pad_last(params["b2"], H_PAD)
    w3 = _pad_last(_pad_axis0(params["w3"], H_PAD), P_PAD).astype(jnp.bfloat16)

    def _const(shape):
        # Whole-array block, same index every step -> DMA'd once, stays resident.
        return pl.BlockSpec(shape, lambda bi, ti: (0,) * len(shape))

    z_pad = pl.pallas_call(
        functools.partial(_barlow_kernel, hw_total=float(hw)),
        out_shape=jax.ShapeDtypeStruct((2, n, P_PAD), jnp.float32),
        grid_spec=pltpu.PrefetchScalarGridSpec(
            num_scalar_prefetch=0,
            grid=(2, n_tiles),                      # (branch, spatial tile)
            in_specs=[
                pl.BlockSpec((None, n, hw_tile, c), lambda bi, ti: (bi, 0, ti, 0)),
                _const((c, F_PAD)),
                _const((F_PAD, FEATURE_DIM)),
                _const((FEATURE_DIM, H_PAD)),
                _const((1, H_PAD)),
                _const((1, H_PAD)),
                _const((H_PAD, H_PAD)),
                _const((1, H_PAD)),
                _const((1, H_PAD)),
                _const((H_PAD, P_PAD)),
            ],
            out_specs=pl.BlockSpec((None, n, P_PAD), lambda bi, ti: (bi, 0, 0)),
            scratch_shapes=[pltpu.VMEM((n, F_PAD), jnp.float32)],
        ),
        compiler_params=pltpu.CompilerParams(
            dimension_semantics=("parallel", "arbitrary"),
            vmem_limit_bytes=32 * 1024 * 1024,
        ),
    )(x, wconv, wfeat, w1, g1, b1, w2, g2, b2, w3)

    # Lane-dense [N, 128] output, sliced to the true projection width here.
    return z_pad[0, :, :NUM_PROJECTION], z_pad[1, :, :NUM_PROJECTION]


# --------------------------- parameter init ----------------------------------
def init_params(key, cin):
    ks = jax.random.split(key, 5)

    def lin(k, fan_in, fan_out):
        # nn.Linear-style uniform init (stored transposed: [in, out]).
        bound = 1.0 / jnp.sqrt(fan_in)
        return jax.random.uniform(k, (fan_in, fan_out), jnp.float32, -bound, bound)

    return {
        "wconv": lin(ks[0], cin, ENC_FEAT),
        "wfeat": lin(ks[1], ENC_FEAT, FEATURE_DIM),
        "w1": lin(ks[2], FEATURE_DIM, NUM_HIDDEN),
        "g1": jnp.ones((1, NUM_HIDDEN), jnp.float32),   # BatchNorm1d defaults
        "b1": jnp.zeros((1, NUM_HIDDEN), jnp.float32),
        "w2": lin(ks[3], NUM_HIDDEN, NUM_HIDDEN),
        "g2": jnp.ones((1, NUM_HIDDEN), jnp.float32),
        "b2": jnp.zeros((1, NUM_HIDDEN), jnp.float32),
        "w3": lin(ks[4], NUM_HIDDEN, NUM_PROJECTION),
    }


# --------------------------- pure-JAX reference -------------------------------
def reference_forward(y1, y2, params):
    """Same math (bf16 MXU operands, f32 accumulate) in plain JAX."""
    bf16, f32 = jnp.bfloat16, jnp.float32
    wconv = params["wconv"].astype(bf16)
    wfeat = params["wfeat"].astype(bf16)
    w1 = params["w1"].astype(bf16)
    w2 = params["w2"].astype(bf16)
    w3 = params["w3"].astype(bf16)

    def bn(v, g, b):
        mu = jnp.mean(v, axis=0, keepdims=True)
        vc = v - mu
        var = jnp.mean(vc * vc, axis=0, keepdims=True)
        return vc * jax.lax.rsqrt(var + BN_EPS) * g + b

    def branch(y):
        n, c, hgt, wid = y.shape
        x = jnp.transpose(y, (0, 2, 3, 1)).reshape(n, hgt * wid, c).astype(bf16)
        h = jnp.maximum(
            jnp.einsum("nsc,cf->nsf", x, wconv, preferred_element_type=f32), 0.0)
        feat = jnp.mean(h, axis=1)
        e = jnp.dot(feat.astype(bf16), wfeat, preferred_element_type=f32)
        h1 = jnp.maximum(
            bn(jnp.dot(e.astype(bf16), w1, preferred_element_type=f32),
               params["g1"], params["b1"]), 0.0)
        h2 = jnp.maximum(
            bn(jnp.dot(h1.astype(bf16), w2, preferred_element_type=f32),
               params["g2"], params["b2"]), 0.0)
        return jnp.dot(h2.astype(bf16), w3, preferred_element_type=f32)

    return branch(y1), branch(y2)


# --------------------------------- main ---------------------------------------
if __name__ == "__main__":
    key = jax.random.PRNGKey(0)
    k_params, k_y1, k_y2 = jax.random.split(key, 3)

    N, C, H, W = 2, 4, 16, 16            # small NCHW inputs (PyTorch convention)
    y1 = jax.random.normal(k_y1, (N, C, H, W), jnp.float32)
    y2 = jax.random.normal(k_y2, (N, C, H, W), jnp.float32)

    params = init_params(k_params, C)

    z1, z2 = barlow_twins_forward(y1, y2, params)
    jax.block_until_ready((z1, z2))

    r1, r2 = reference_forward(y1, y2, params)
    err = max(float(jnp.max(jnp.abs(z1 - r1))), float(jnp.max(jnp.abs(z2 - r2))))

    assert z1.shape == (N, NUM_PROJECTION) and z2.shape == (N, NUM_PROJECTION)
    assert bool(jnp.all(jnp.isfinite(z1))) and bool(jnp.all(jnp.isfinite(z2)))
    assert err < 1e-1, f"kernel/reference mismatch: max abs err = {err}"
    print("KERNEL_OK")
</pallas_src>

<mosaic_0001>
module attributes {stable_mosaic.version = 11 : i64} {
  func.func @_barlow_kernel(%arg0: i32, %arg1: i32, %arg2: memref<1x2x128x4xbf16, #tpu.memory_space<vmem>>, %arg3: memref<4x128xbf16, #tpu.memory_space<vmem>>, %arg4: memref<128x2048xbf16, #tpu.memory_space<vmem>>, %arg5: memref<2048x128xbf16, #tpu.memory_space<vmem>>, %arg6: memref<1x128xf32, #tpu.memory_space<vmem>>, %arg7: memref<1x128xf32, #tpu.memory_space<vmem>>, %arg8: memref<128x128xbf16, #tpu.memory_space<vmem>>, %arg9: memref<1x128xf32, #tpu.memory_space<vmem>>, %arg10: memref<1x128xf32, #tpu.memory_space<vmem>>, %arg11: memref<128x128xbf16, #tpu.memory_space<vmem>>, %arg12: memref<1x2x128xf32, #tpu.memory_space<vmem>>, %arg13: memref<2x128xf32, #tpu.memory_space<vmem>>) attributes {dimension_semantics = [#tpu.dimension_semantics<parallel>, #tpu.dimension_semantics<arbitrary>], iteration_bounds = array<i64: 2, 2>, scalar_prefetch = 0 : i64, scratch_operands = 1 : i64, tpu.core_type = #tpu.core_type<tc>, window_params = [{transform_indices = @transform_0, window_bounds = array<i64: 1, 2, 128, 4>}, {pipeline_mode = #tpu.pipeline_mode<synchronous>, transform_indices = @transform_1, window_bounds = array<i64: 4, 128>}, {pipeline_mode = #tpu.pipeline_mode<synchronous>, transform_indices = @transform_2, window_bounds = array<i64: 128, 2048>}, {pipeline_mode = #tpu.pipeline_mode<synchronous>, transform_indices = @transform_3, window_bounds = array<i64: 2048, 128>}, {pipeline_mode = #tpu.pipeline_mode<synchronous>, transform_indices = @transform_4, window_bounds = array<i64: 1, 128>}, {pipeline_mode = #tpu.pipeline_mode<synchronous>, transform_indices = @transform_5, window_bounds = array<i64: 1, 128>}, {pipeline_mode = #tpu.pipeline_mode<synchronous>, transform_indices = @transform_6, window_bounds = array<i64: 128, 128>}, {pipeline_mode = #tpu.pipeline_mode<synchronous>, transform_indices = @transform_7, window_bounds = array<i64: 1, 128>}, {pipeline_mode = #tpu.pipeline_mode<synchronous>, transform_indices = @transform_8, window_bounds = array<i64: 1, 128>}, {pipeline_mode = #tpu.pipeline_mode<synchronous>, transform_indices = @transform_9, window_bounds = array<i64: 128, 128>}, {transform_indices = @transform_10, window_bounds = array<i64: 1, 2, 128>}]} {
    %c0_i32 = arith.constant 0 : i32
    %0 = arith.cmpi eq, %arg1, %c0_i32 : i32
    %1 = arith.extui %0 : i1 to i32
    %c0_i32_0 = arith.constant 0 : i32
    %2 = arith.cmpi ne, %1, %c0_i32_0 : i32
    scf.if %2 {
      %cst_13 = arith.constant 0.000000e+00 : f32
      %18 = vector.broadcast %cst_13 : f32 to vector<2x128xf32>
      %c0_14 = arith.constant 0 : index
      %c0_15 = arith.constant 0 : index
      %19 = vector.load %arg13[%c0_14, %c0_15] : memref<2x128xf32, #tpu.memory_space<vmem>>, vector<2x128xf32>
      tpu.vector_store %arg13[%c0_14, %c0_15], %18 {strides = array<i32>} : memref<2x128xf32, #tpu.memory_space<vmem>>, vector<2x128xf32>,
    } else {
    }
    %c0 = arith.constant 0 : index
    %c0_1 = arith.constant 0 : index
    %c0_2 = arith.constant 0 : index
    %c0_3 = arith.constant 0 : index
    %3 = vector.load %arg2[%c0, %c0_1, %c0_2, %c0_3] : memref<1x2x128x4xbf16, #tpu.memory_space<vmem>>, vector<1x2x128x4xbf16>
    %4 = vector.shape_cast %3 : vector<1x2x128x4xbf16> to vector<2x128x4xbf16>
    %5 = vector.shape_cast %4 : vector<2x128x4xbf16> to vector<256x4xbf16>
    %c0_4 = arith.constant 0 : index
    %c0_5 = arith.constant 0 : index
    %6 = vector.load %arg3[%c0_4, %c0_5] : memref<4x128xbf16, #tpu.memory_space<vmem>>, vector<4x128xbf16>
    %cst = arith.constant dense<0.000000e+00> : vector<256x128xf32>
    %7 = tpu.matmul %5, %6, %cst {dimension_numbers = #tpu.dot_dimension_numbers<[1], [0], [0], [1], [0, 0, 1, 1], [], []>} : vector<256x4xbf16>, vector<4x128xbf16>, vector<256x128xf32> -> vector<256x128xf32>
    %cst_6 = arith.constant 0.000000e+00 : f32
    %8 = vector.broadcast %cst_6 : f32 to vector<256x128xf32>
    %9 = arith.maximumf %7, %8 : vector<256x128xf32>
    %c0_7 = arith.constant 0 : index
    %c0_8 = arith.constant 0 : index
    %10 = vector.load %arg13[%c0_7, %c0_8] : memref<2x128xf32, #tpu.memory_space<vmem>>, vector<2x128xf32>
    %11 = vector.shape_cast %9 : vector<256x128xf32> to vector<2x128x128xf32>
    %cst_9 = arith.constant dense<0.000000e+00> : vector<2x128xf32>
    %12 = vector.multi_reduction <add>, %11, %cst_9 [1] : vector<2x128x128xf32> to vector<2x128xf32>
    %13 = arith.addf %10, %12 : vector<2x128xf32>
    %c0_10 = arith.constant 0 : index
    %c0_11 = arith.constant 0 : index
    %14 = vector.load %arg13[%c0_10, %c0_11] : memref<2x128xf32, #tpu.memory_space<vmem>>, vector<2x128xf32>
    tpu.vector_store %arg13[%c0_10, %c0_11], %13 {strides = array<i32>} : memref<2x128xf32, #tpu.memory_space<vmem>>, vector<2x128xf32>,
    %c1_i32 = arith.constant 1 : i32
    %15 = arith.cmpi eq, %arg1, %c1_i32 : i32
    %16 = arith.extui %15 : i1 to i32
    %c0_i32_12 = arith.constant 0 : i32
    %17 = arith.cmpi ne, %16, %c0_i32_12 : i32
    scf.if %17 {
      %c0_13 = arith.constant 0 : index
      %c0_14 = arith.constant 0 : index
      %18 = vector.load %arg13[%c0_13, %c0_14] : memref<2x128xf32, #tpu.memory_space<vmem>>, vector<2x128xf32>
      %cst_15 = arith.constant 3.906250e-03 : f32
      %19 = vector.broadcast %cst_15 : f32 to vector<2x128xf32>
      %20 = arith.mulf %18, %19 : vector<2x128xf32>
      %21 = arith.truncf %20 : vector<2x128xf32> to vector<2x128xbf16>
      %c0_16 = arith.constant 0 : index
      %c0_17 = arith.constant 0 : index
      %22 = vector.load %arg4[%c0_16, %c0_17] : memref<128x2048xbf16, #tpu.memory_space<vmem>>, vector<128x2048xbf16>
      %cst_18 = arith.constant dense<0.000000e+00> : vector<2x2048xf32>
      %23 = tpu.matmul %21, %22, %cst_18 {dimension_numbers = #tpu.dot_dimension_numbers<[1], [0], [0], [1], [0, 0, 1, 1], [], []>} : vector<2x128xbf16>, vector<128x2048xbf16>, vector<2x2048xf32> -> vector<2x2048xf32>
      %24 = arith.truncf %23 : vector<2x2048xf32> to vector<2x2048xbf16>
      %c0_19 = arith.constant 0 : index
      %c0_20 = arith.constant 0 : index
      %25 = vector.load %arg5[%c0_19, %c0_20] : memref<2048x128xbf16, #tpu.memory_space<vmem>>, vector<2048x128xbf16>
      %cst_21 = arith.constant dense<0.000000e+00> : vector<2x128xf32>
      %26 = tpu.matmul %24, %25, %cst_21 {dimension_numbers = #tpu.dot_dimension_numbers<[1], [0], [0], [1], [0, 0, 1, 1], [], []>} : vector<2x2048xbf16>, vector<2048x128xbf16>, vector<2x128xf32> -> vector<2x128xf32>
      %c0_22 = arith.constant 0 : index
      %c0_23 = arith.constant 0 : index
      %27 = vector.load %arg6[%c0_22, %c0_23] : memref<1x128xf32, #tpu.memory_space<vmem>>, vector<1x128xf32>
      %c0_24 = arith.constant 0 : index
      %c0_25 = arith.constant 0 : index
      %28 = vector.load %arg7[%c0_24, %c0_25] : memref<1x128xf32, #tpu.memory_space<vmem>>, vector<1x128xf32>
      %cst_26 = arith.constant dense<0.000000e+00> : vector<128xf32>
      %29 = vector.multi_reduction <add>, %26, %cst_26 [0] : vector<2x128xf32> to vector<128xf32>
      %30 = vector.shape_cast %29 : vector<128xf32> to vector<1x128xf32>
      %cst_27 = arith.constant 2.000000e+00 : f32
      %31 = vector.broadcast %cst_27 : f32 to vector<1x128xf32>
      %32 = arith.divf %30, %31 : vector<1x128xf32>
      %33 = vector.broadcast %32 : vector<1x128xf32> to vector<2x128xf32>
      %34 = arith.subf %26, %33 : vector<2x128xf32>
      %35 = arith.mulf %34, %34 : vector<2x128xf32>
      %cst_28 = arith.constant dense<0.000000e+00> : vector<128xf32>
      %36 = vector.multi_reduction <add>, %35, %cst_28 [0] : vector<2x128xf32> to vector<128xf32>
      %37 = vector.shape_cast %36 : vector<128xf32> to vector<1x128xf32>
      %cst_29 = arith.constant 2.000000e+00 : f32
      %38 = vector.broadcast %cst_29 : f32 to vector<1x128xf32>
      %39 = arith.divf %37, %38 : vector<1x128xf32>
      %cst_30 = arith.constant 9.99999974E-6 : f32
      %40 = vector.broadcast %cst_30 : f32 to vector<1x128xf32>
      %41 = arith.addf %39, %40 : vector<1x128xf32>
      %42 = math.rsqrt %41 : vector<1x128xf32>
      %43 = vector.broadcast %42 : vector<1x128xf32> to vector<2x128xf32>
      %44 = arith.mulf %34, %43 : vector<2x128xf32>
      %45 = vector.broadcast %27 : vector<1x128xf32> to vector<2x128xf32>
      %46 = arith.mulf %44, %45 : vector<2x128xf32>
      %47 = vector.broadcast %28 : vector<1x128xf32> to vector<2x128xf32>
      %48 = arith.addf %46, %47 : vector<2x128xf32>
      %cst_31 = arith.constant 0.000000e+00 : f32
      %49 = vector.broadcast %cst_31 : f32 to vector<2x128xf32>
      %50 = arith.maximumf %48, %49 : vector<2x128xf32>
      %51 = arith.truncf %50 : vector<2x128xf32> to vector<2x128xbf16>
      %c0_32 = arith.constant 0 : index
      %c0_33 = arith.constant 0 : index
      %52 = vector.load %arg8[%c0_32, %c0_33] : memref<128x128xbf16, #tpu.memory_space<vmem>>, vector<128x128xbf16>
      %cst_34 = arith.constant dense<0.000000e+00> : vector<2x128xf32>
      %53 = tpu.matmul %51, %52, %cst_34 {dimension_numbers = #tpu.dot_dimension_numbers<[1], [0], [0], [1], [0, 0, 1, 1], [], []>} : vector<2x128xbf16>, vector<128x128xbf16>, vector<2x128xf32> -> vector<2x128xf32>
      %c0_35 = arith.constant 0 : index
      %c0_36 = arith.constant 0 : index
      %54 = vector.load %arg9[%c0_35, %c0_36] : memref<1x128xf32, #tpu.memory_space<vmem>>, vector<1x128xf32>
      %c0_37 = arith.constant 0 : index
      %c0_38 = arith.constant 0 : index
      %55 = vector.load %arg10[%c0_37, %c0_38] : memref<1x128xf32, #tpu.memory_space<vmem>>, vector<1x128xf32>
      %cst_39 = arith.constant dense<0.000000e+00> : vector<128xf32>
      %56 = vector.multi_reduction <add>, %53, %cst_39 [0] : vector<2x128xf32> to vector<128xf32>
      %57 = vector.shape_cast %56 : vector<128xf32> to vector<1x128xf32>
      %cst_40 = arith.constant 2.000000e+00 : f32
      %58 = vector.broadcast %cst_40 : f32 to vector<1x128xf32>
      %59 = arith.divf %57, %58 : vector<1x128xf32>
      %60 = vector.broadcast %59 : vector<1x128xf32> to vector<2x128xf32>
      %61 = arith.subf %53, %60 : vector<2x128xf32>
      %62 = arith.mulf %61, %61 : vector<2x128xf32>
      %cst_41 = arith.constant dense<0.000000e+00> : vector<128xf32>
      %63 = vector.multi_reduction <add>, %62, %cst_41 [0] : vector<2x128xf32> to vector<128xf32>
      %64 = vector.shape_cast %63 : vector<128xf32> to vector<1x128xf32>
      %cst_42 = arith.constant 2.000000e+00 : f32
      %65 = vector.broadcast %cst_42 : f32 to vector<1x128xf32>
      %66 = arith.divf %64, %65 : vector<1x128xf32>
      %cst_43 = arith.constant 9.99999974E-6 : f32
      %67 = vector.broadcast %cst_43 : f32 to vector<1x128xf32>
      %68 = arith.addf %66, %67 : vector<1x128xf32>
      %69 = math.rsqrt %68 : vector<1x128xf32>
      %70 = vector.broadcast %69 : vector<1x128xf32> to vector<2x128xf32>
      %71 = arith.mulf %61, %70 : vector<2x128xf32>
      %72 = vector.broadcast %54 : vector<1x128xf32> to vector<2x128xf32>
      %73 = arith.mulf %71, %72 : vector<2x128xf32>
      %74 = vector.broadcast %55 : vector<1x128xf32> to vector<2x128xf32>
      %75 = arith.addf %73, %74 : vector<2x128xf32>
      %cst_44 = arith.constant 0.000000e+00 : f32
      %76 = vector.broadcast %cst_44 : f32 to vector<2x128xf32>
      %77 = arith.maximumf %75, %76 : vector<2x128xf32>
      %78 = arith.truncf %77 : vector<2x128xf32> to vector<2x128xbf16>
      %c0_45 = arith.constant 0 : index
      %c0_46 = arith.constant 0 : index
      %79 = vector.load %arg11[%c0_45, %c0_46] : memref<128x128xbf16, #tpu.memory_space<vmem>>, vector<128x128xbf16>
      %cst_47 = arith.constant dense<0.000000e+00> : vector<2x128xf32>
      %80 = tpu.matmul %78, %79, %cst_47 {dimension_numbers = #tpu.dot_dimension_numbers<[1], [0], [0], [1], [0, 0, 1, 1], [], []>} : vector<2x128xbf16>, vector<128x128xbf16>, vector<2x128xf32> -> vector<2x128xf32>
      %c0_48 = arith.constant 0 : index
      %c0_49 = arith.constant 0 : index
      %c0_50 = arith.constant 0 : index
      %81 = vector.load %arg12[%c0_48, %c0_49, %c0_50] : memref<1x2x128xf32, #tpu.memory_space<vmem>>, vector<1x2x128xf32>
      %82 = vector.shape_cast %81 : vector<1x2x128xf32> to vector<2x128xf32>
      %83 = vector.shape_cast %80 : vector<2x128xf32> to vector<1x2x128xf32>
      tpu.vector_store %arg12[%c0_48, %c0_49, %c0_50], %83 {strides = array<i32>} : memref<1x2x128xf32, #tpu.memory_space<vmem>>, vector<1x2x128xf32>,
    } else {
    }
    return
  }
  func.func @transform_0(%arg0: i32, %arg1: i32) -> (i32, i32, i32, i32) {
    %c0_i32 = arith.constant 0 : i32
    %c0_i32_0 = arith.constant 0 : i32
    %c0_i32_1 = arith.constant 0 : i32
    return %arg0, %c0_i32, %arg1, %c0_i32_0 : i32, i32, i32, i32
  }
  func.func @transform_1(%arg0: i32, %arg1: i32) -> (i32, i32) {
    %c0_i32 = arith.constant 0 : i32
    %c0_i32_0 = arith.constant 0 : i32
    %c0_i32_1 = arith.constant 0 : i32
    return %c0_i32, %c0_i32_0 : i32, i32
  }
  func.func @transform_2(%arg0: i32, %arg1: i32) -> (i32, i32) {
    %c0_i32 = arith.constant 0 : i32
    %c0_i32_0 = arith.constant 0 : i32
    %c0_i32_1 = arith.constant 0 : i32
    return %c0_i32, %c0_i32_0 : i32, i32
  }
  func.func @transform_3(%arg0: i32, %arg1: i32) -> (i32, i32) {
    %c0_i32 = arith.constant 0 : i32
    %c0_i32_0 = arith.constant 0 : i32
    %c0_i32_1 = arith.constant 0 : i32
    return %c0_i32, %c0_i32_0 : i32, i32
  }
  func.func @transform_4(%arg0: i32, %arg1: i32) -> (i32, i32) {
    %c0_i32 = arith.constant 0 : i32
    %c0_i32_0 = arith.constant 0 : i32
    %c0_i32_1 = arith.constant 0 : i32
    return %c0_i32, %c0_i32_0 : i32, i32
  }
  func.func @transform_5(%arg0: i32, %arg1: i32) -> (i32, i32) {
    %c0_i32 = arith.constant 0 : i32
    %c0_i32_0 = arith.constant 0 : i32
    %c0_i32_1 = arith.constant 0 : i32
    return %c0_i32, %c0_i32_0 : i32, i32
  }
  func.func @transform_6(%arg0: i32, %arg1: i32) -> (i32, i32) {
    %c0_i32 = arith.constant 0 : i32
    %c0_i32_0 = arith.constant 0 : i32
    %c0_i32_1 = arith.constant 0 : i32
    return %c0_i32, %c0_i32_0 : i32, i32
  }
  func.func @transform_7(%arg0: i32, %arg1: i32) -> (i32, i32) {
    %c0_i32 = arith.constant 0 : i32
    %c0_i32_0 = arith.constant 0 : i32
    %c0_i32_1 = arith.constant 0 : i32
    return %c0_i32, %c0_i32_0 : i32, i32
  }
  func.func @transform_8(%arg0: i32, %arg1: i32) -> (i32, i32) {
    %c0_i32 = arith.constant 0 : i32
    %c0_i32_0 = arith.constant 0 : i32
    %c0_i32_1 = arith.constant 0 : i32
    return %c0_i32, %c0_i32_0 : i32, i32
  }
  func.func @transform_9(%arg0: i32, %arg1: i32) -> (i32, i32) {
    %c0_i32 = arith.constant 0 : i32
    %c0_i32_0 = arith.constant 0 : i32
    %c0_i32_1 = arith.constant 0 : i32
    return %c0_i32, %c0_i32_0 : i32, i32
  }
  func.func @transform_10(%arg0: i32, %arg1: i32) -> (i32, i32, i32) {
    %c0_i32 = arith.constant 0 : i32
    %c0_i32_0 = arith.constant 0 : i32
    %c0_i32_1 = arith.constant 0 : i32
    return %arg0, %c0_i32, %c0_i32_0 : i32, i32, i32
  }
}

</mosaic_0001>

<bundles_post_ra>
// kernel: barlow_twins_forward.1
= control target key start
LH: loop header
LB: loop body
LE: loop exit
PB: predicated region body
PF: predicated region fallthrough
CT: control target
= control target key end

     0   :  { %s4731_s13 = smov 0   ;;  %s4733_s14 = smov 0   ;;  %s5751_s0 = inlined_call_operand.vmem [shape: bf16[2,2,256,4], index: 0, kind: input, shape index: {}]   ;;  %s5752_s1 = inlined_call_operand.vmem [shape: bf16[4,128], index: 1, kind: input, shape index: {}]   ;;  %s5753_s2 = inlined_call_operand.vmem [shape: bf16[128,2048], index: 2, kind: input, shape index: {}]   ;;  %s5754_s3 = inlined_call_operand.vmem [shape: bf16[2048,128], index: 3, kind: input, shape index: {}]   ;;  %s5755_s4 = inlined_call_operand.vmem [shape: f32[1,128], index: 4, kind: input, shape index: {}]   ;;  %s5756_s5 = inlined_call_operand.vmem [shape: f32[1,128], index: 5, kind: input, shape index: {}]   ;;  %s5757_s6 = inlined_call_operand.vmem [shape: bf16[128,128], index: 6, kind: input, shape index: {}]   ;;  %s5758_s7 = inlined_call_operand.vmem [shape: f32[1,128], index: 7, kind: input, shape index: {}]   ;;  %s5759_s8 = inlined_call_operand.vmem [shape: f32[1,128], index: 8, kind: input, shape index: {}]   ;;  %s5760_s9 = inlined_call_operand.vmem [shape: bf16[128,128], index: 9, kind: input, shape index: {}]   ;;  %s5761_s10 = inlined_call_operand.vmem [shape: f32[2,2,128], index: 10, kind: output, shape index: {}]  }
   0x1   :  { %s4735_s15 = smov 0   ;;  %s4737_s16 = smov 0  }
   0x2   :  { %s4739_s17 = smov 0   ;;  %s4741_s18 = smov 0  }
   0x3   :  { %s4743_s19 = smov 0  }
   0x4 LB: > { %s29_s20 = sadd.s32 1, %s4662_s17  ;;  %s32_s21 = sadd.s32 1, %s4666_s18  ;;  %s4670_s19 = sphi %s4743_s19, %s20_s19   ;;  %s4666_s18 = sphi %s4741_s18, %s5773_s18   ;;  %s4662_s17 = sphi %s4739_s17, %s5772_s17   ;;  %s4658_s16 = sphi %s4737_s16, %s5771_s16   ;;  %s4654_s15 = sphi %s4735_s15, %s5770_s15   ;;  %s4650_s14 = sphi %s4733_s14, %s5769_s14   ;;  %s4646_s13 = sphi %s4731_s13, %s5768_s13  }
   0x5   : > { %p30_p0 = scmp.ge.s32.totalorder %s29_s20, 2  ;;  %p48_p1 = scmp.ne.s32.totalorder %s4650_s14, %s4646_s13 }
   0x6   : > { %p49_p2 = scmp.eq.s32.totalorder %s4670_s19, 0  ;;  %s41_s25 = sadd.s32 1, %s4650_s14 }
   0x7   : > { %s5775_s20 = smov (%p30_p0, %s29_s20), 0  ;;  %s5777_s21 = smov (!%p30_p0, %s32_s21), %s4666_s18 }
   0x8   : > { %5764 = sst [smem:[#allocation4_spill]] %s5775_s20  ;;  %p50_p3 = por %p49_p2, %p48_p1 }
   0x9   : > { %p34_p4 = scmp.ge.s32.totalorder %s5777_s21, 2  ;;  %s37_s22 = ssub.s32 %s4662_s17, %s5775_s20 }
   0xa   : > { %p3783_p6 = scmp.ge.s32.totalorder %s4670_s19, 4 }
   0xb   : > { %s5779_s21 = smov (%p34_p4, %s5777_s21), 0 }
   0xc   : > { %5765 = sst [smem:[#allocation5_spill]] %s5779_s21  ;;  %s36_s23 = ssub.s32 %s4666_s18, %s5779_s21 }
   0xd   : > { %s38_s24 = sor.u32 %s37_s22, %s36_s23  ;;  %316 = sbr.rel (%p3783_p6) target bundleno = 35 (0x23), region = 52 }
   0xe   : > { %p39_p5 = scmp.eq.s32.totalorder %s38_s24, 0 }
  0x10   : > { %s4782_s26 = scalar_select %p39_p5, %s4650_s14, %s41_s25  }
  0x14   : > { %319 = sbr.rel (!%p50_p3) target bundleno = 35 (0x23), region = 56  ;;  %s321_s27 = sand.u32 (%p50_p3), 1, %s4650_s14  }
  0x15   : > { %s3785_s28 = sshll.u32 (%p50_p3), %s4662_s17, 4  ;;  %s3784_s29 = sshll.u32 (%p50_p3), %s321_s27, 7 }
  0x16   : > { %s3786_s30 = sshll.u32 (%p50_p3), %s4666_s18, 6  ;;  %s323_s23 = scalar_lea.vmem (%p50_p3), [#allocation3], %s3784_s29 }
  0x17   : > { %s326_s11 = sadd.s32 (%p50_p3), %s3786_s30, %s3785_s28 }
  0x18   : > { %s3787_s12 = sshll.u32 (%p50_p3), %s326_s11, 2 }
  0x19   : > { %s4791_s22 = scalar_lea.vmem (%p50_p3), %s5751_s0, %s3787_s12 }
  0x1a   : > { %v344_v0 = vld [vmem:[%s4791_s22] sm:$0xff] (%p50_p3)   ;;  %v348_v1 = vld [vmem:[%s4791_s22 + $0x8] sm:$0xff] (%p50_p3)   ;;  %v352_v2 = vld [vmem:[%s4791_s22 + $0x10] sm:$0xff] (%p50_p3)  }
  0x1b   : > { %345 = vst [vmem:[%s323_s23] sm:$0xff] %v344_v0   ;;  %349 = vst [vmem:[%s323_s23 + $0x8] sm:$0xff] %v348_v1   ;;  %v356_v3 = vld [vmem:[%s4791_s22 + $0x18] sm:$0xff]   ;;  %v360_v4 = vld [vmem:[%s4791_s22 + $0x20] sm:$0xff]  }
  0x1c   : > { %353 = vst [vmem:[%s323_s23 + $0x10] sm:$0xff] %v352_v2   ;;  %v364_v5 = vld [vmem:[%s4791_s22 + $0x28] sm:$0xff]   ;;  %357 = vst [vmem:[%s323_s23 + $0x18] sm:$0xff] %v356_v3   ;;  %v368_v6 = vld [vmem:[%s4791_s22 + $0x30] sm:$0xff]  }
  0x1d   : > { %361 = vst [vmem:[%s323_s23 + $0x20] sm:$0xff] %v360_v4   ;;  %365 = vst [vmem:[%s323_s23 + $0x28] sm:$0xff] %v364_v5   ;;  %v372_v7 = vld [vmem:[%s4791_s22 + $0x38] sm:$0xff]   ;;  %v376_v8 = vld [vmem:[%s4791_s22 + $0x80] sm:$0xff]  }
  0x1e   : > { %369 = vst [vmem:[%s323_s23 + $0x30] sm:$0xff] %v368_v6   ;;  %373 = vst [vmem:[%s323_s23 + $0x38] sm:$0xff] %v372_v7   ;;  %v380_v9 = vld [vmem:[%s4791_s22 + $0x88] sm:$0xff]   ;;  %v384_v10 = vld [vmem:[%s4791_s22 + $0x90] sm:$0xff]  }
  0x1f   : > { %377 = vst [vmem:[%s323_s23 + $0x40] sm:$0xff] %v376_v8   ;;  %v388_v11 = vld [vmem:[%s4791_s22 + $0x98] sm:$0xff]   ;;  %381 = vst [vmem:[%s323_s23 + $0x48] sm:$0xff] %v380_v9   ;;  %v392_v12 = vld [vmem:[%s4791_s22 + $0xa0] sm:$0xff]  }
  0x20   : > { %385 = vst [vmem:[%s323_s23 + $0x50] sm:$0xff] %v384_v10   ;;  %389 = vst [vmem:[%s323_s23 + $0x58] sm:$0xff] %v388_v11   ;;  %v396_v13 = vld [vmem:[%s4791_s22 + $0xa8] sm:$0xff]   ;;  %v400_v14 = vld [vmem:[%s4791_s22 + $0xb0] sm:$0xff]  }
  0x21   : > { %393 = vst [vmem:[%s323_s23 + $0x60] sm:$0xff] %v392_v12   ;;  %397 = vst [vmem:[%s323_s23 + $0x68] sm:$0xff] %v396_v13   ;;  %v404_v15 = vld [vmem:[%s4791_s22 + $0xb8] sm:$0xff]  }
  0x22   : > { %401 = vst [vmem:[%s323_s23 + $0x70] sm:$0xff] %v400_v14   ;;  %405 = vst [vmem:[%s323_s23 + $0x78] sm:$0xff] %v404_v15  }
  0x23 PF: > { %p3788_p7 = scmp.ge.s32.totalorder %s4670_s19, 1  ;;  %p493_p8 = scmp.lt.s32.totalorder %s4670_s19, 5 }
  0x25   : > { %p494_p9 = pnand %p3788_p7, %p493_p8 }
  0x26   : > { %s500_s20 = sand.u32 (!%p494_p9), 1, %s4646_s13   ;;  %p537_p10 = scmp.lt.s32.totalorder (!%p494_p9), %s4658_s16, 1 }
  0x27   : > { %497 = sbr.rel (%p494_p9) target bundleno = 1404 (0x57c), region = 97  ;;  %s3789_s21 = sshll.u32 (!%p494_p9), %s500_s20, 7 }
  0x28   : > { %s4819_s29 = scalar_lea.vmem (!%p494_p9), [#allocation3], %s3789_s21  ;;  %p3791_p11 = scmp.ne.s32.totalorder (!%p494_p9), %s4654_s15, 0 }
  0x2e   : > { %s5781_s16 = smov (!%p537_p10, %s4658_s16), 1  ;;  %545 = sbr.rel (%p3791_p11) target bundleno = 53 (0x35), region = 105 }
  0x2f   : > { %s3790_s24 = sshll.u32 %s5781_s16, 1  ;;  %v4672_v16 = vmov (!%p3791_p11), 0.0  }
  0x30   : > { %s4817_s28 = scalar_lea.vmem %s5761_s10, %s3790_s24  ;;  %546 = vst [vmem:[#allocation2] sm:$0x3] (!%p3791_p11), %v4672_v16 }
  0x35 PF: > { %v579_v17 = vld [vmem:[%s5752_s1] sm:$0x3]  ;;  %vm709_vm0 = vcmask 1041408   ;;  %v4452_v18 = vld [vmem:[%s4819_s29] sm:$0xff]   ;;  %vm660_vm1 = vcmask 31744   ;;  %v4454_v21 = vld [vmem:[%s4819_s29 + $0x8] sm:$0xff]  }
  0x36   : > { %4390 = vmatprep.subr.msk.bf16.mxu0 %vm709_vm0, %v579_v17  ;;  %4391 = vmatprep.subr.msk.bf16.mxu1 %vm709_vm0, %v579_v17  ;;  %v711_v19 = vsel %vm709_vm0, %v579_v17, 0  ;;  %v4453_v20 = vld [vmem:[%s4819_s29 + $0x40] sm:$0xff]   ;;  %v4455_v22 = vld [vmem:[%s4819_s29 + $0x48] sm:$0xff]   ;;  %v4456_v23 = vld [vmem:[%s4819_s29 + $0x10] sm:$0xff]   ;;  %vm951_vm2 = vcmask 1041409   ;;  %p3824_p12 = scmp.ne.s32.totalorder %s4654_s15, 1 }
  0x37   : > { %4315 = vmatpush3.bf16.msra.mxu0 %v711_v19  ;;  %4389 = vmatpush3.bf16.msra.mxu1 %v711_v19  ;;  %v4457_v24 = vld [vmem:[%s4819_s29 + $0x50] sm:$0xff]   ;;  %v4458_v25 = vld [vmem:[%s4819_s29 + $0x18] sm:$0xff]   ;;  %v4460_v27 = vld [vmem:[%s4819_s29 + $0x20] sm:$0xff]   ;;  %vm4675_vm3 = vmmov (!%p3824_p12), 0  }
  0x38   : > { %4316 = vmatprep.mubr.msk.bf16.mxu0 %vm660_vm1, %v4452_v18  ;;  %4332 = vmatprep.mubr.msk.bf16.mxu1 %vm660_vm1, %v4453_v20  ;;  %v4459_v26 = vld [vmem:[%s4819_s29 + $0x58] sm:$0xff]   ;;  %v4461_v28 = vld [vmem:[%s4819_s29 + $0x60] sm:$0xff]   ;;  %v4462_v29 = vld [vmem:[%s4819_s29 + $0x28] sm:$0xff]  }
  0x39   : > { %v4463_v30 = vld [vmem:[%s4819_s29 + $0x68] sm:$0xff]   ;;  %v4464_v31 = vld [vmem:[%s4819_s29 + $0x30] sm:$0xff]   ;;  %v4466_v33 = vld [vmem:[%s4819_s29 + $0x38] sm:$0xff]  }
  0x3a   : > { %4317 = vmatmul.mubr.msk.bf16.vlgmr.msra.gmra.mrb[0].mxu0 %vm660_vm1, %v4454_v21  ;;  %4333 = vmatmul.mubr.msk.bf16.vlgmr.msra.gmra.mrb[0].mxu1 %vm660_vm1, %v4455_v22  ;;  %v4465_v32 = vld [vmem:[%s4819_s29 + $0x70] sm:$0xff]   ;;  %v4467_v34 = vld [vmem:[%s4819_s29 + $0x78] sm:$0xff]  }
  0x3b   : > { %4320 = vmatprep.mubr.msk.bf16.mxu0 %vm660_vm1, %v4456_v23  ;;  %4336 = vmatprep.mubr.msk.bf16.mxu1 %vm660_vm1, %v4457_v24 }
  0x42   : > { %4321 = vmatmul.mubr.msk.bf16.gmra.mrb[4].mxu0 %vm660_vm1, %v4458_v25  ;;  %4337 = vmatmul.mubr.msk.bf16.gmra.mrb[4].mxu1 %vm660_vm1, %v4459_v26 }
  0x43   : > { %4324 = vmatprep.mubr.msk.bf16.mxu0 %vm660_vm1, %v4460_v27  ;;  %4340 = vmatprep.mubr.msk.bf16.mxu1 %vm660_vm1, %v4461_v28 }
  0x4a   : > { %4325 = vmatmul.mubr.msk.bf16.gmra.mrb[8].mxu0 %vm660_vm1, %v4462_v29  ;;  %4341 = vmatmul.mubr.msk.bf16.gmra.mrb[8].mxu1 %vm660_vm1, %v4463_v30 }
  0x4b   : > { %4328 = vmatprep.mubr.msk.bf16.mxu0 %vm660_vm1, %v4464_v31  ;;  %4344 = vmatprep.mubr.msk.bf16.mxu1 %vm660_vm1, %v4465_v32 }
  0x52   : > { %4329 = vmatmul.mubr.msk.bf16.gmra.mrb[12].mxu0 %vm660_vm1, %v4466_v33  ;;  %4345 = vmatmul.mubr.msk.bf16.gmra.mrb[12].mxu1 %vm660_vm1, %v4467_v34 }
 0x10d   : > { %v4318_v35 = vpop.f32.mrb[0].mxu0  ;;  %v4334_v36 = vpop.f32.mrb[0].mxu1 }
 0x10e   : > { %v747_v37 = vpop.f32.mrb[1].mxu0  ;;  %v811_v38 = vpop.f32.mrb[1].mxu1  ;;  %v876_v47 = vmax.f32 %v4318_v35, 0.0  ;;  %v892_v49 = vmax.f32 %v4334_v36, 0.0 }
 0x10f   : > { %v4319_v39 = vpop.f32.mrb[2].mxu0  ;;  %v4335_v40 = vpop.f32.mrb[2].mxu1  ;;  %v874_v42 = vmax.f32 %v747_v37, 0.0  ;;  %v890_v45 = vmax.f32 %v811_v38, 0.0 }
 0x110   : > { %v750_v41 = vpop.f32.mrb[3].mxu0  ;;  %v814_v44 = vpop.f32.mrb[3].mxu1  ;;  %v877_v51 = vmax.f32 %v4319_v39, 0.0  ;;  %v893_v54 = vmax.f32 %v4335_v40, 0.0 }
 0x111   : > { %v875_v43 = vmax.f32 %v750_v41, 0.0  ;;  %v891_v46 = vmax.f32 %v814_v44, 0.0 }
 0x113   : > { %v907_v48 = vadd.f32 %v875_v43, %v874_v42  ;;  %v928_v50 = vadd.f32 %v891_v46, %v890_v45 }
 0x115   : > { %v908_v52 = vadd.f32 %v907_v48, %v876_v47  ;;  %v4322_v53 = vpop.f32.mrb[4].mxu0  ;;  %v929_v55 = vadd.f32 %v928_v50, %v892_v49  ;;  %v4338_v56 = vpop.f32.mrb[4].mxu1 }
 0x116   : > { %v763_v57 = vpop.f32.mrb[5].mxu0  ;;  %v827_v60 = vpop.f32.mrb[5].mxu1  ;;  %v880_v7 = vmax.f32 %v4322_v53, 0.0  ;;  %v896_v9 = vmax.f32 %v4338_v56, 0.0 }
 0x117   : > { %v878_v58 = vmax.f32 %v763_v57, 0.0  ;;  %v909_v59 = vadd.f32 %v908_v52, %v877_v51  ;;  %v4323_v61 = vpop.f32.mrb[6].mxu0  ;;  %v894_v62 = vmax.f32 %v827_v60, 0.0  ;;  %v930_v63 = vadd.f32 %v929_v55, %v893_v54  ;;  %v4339_v0 = vpop.f32.mrb[6].mxu1 }
 0x118   : > { %v766_v1 = vpop.f32.mrb[7].mxu0  ;;  %v830_v4 = vpop.f32.mrb[7].mxu1  ;;  %v881_v11 = vmax.f32 %v4323_v61, 0.0  ;;  %v897_v14 = vmax.f32 %v4339_v0, 0.0 }
 0x119   : > { %v910_v2 = vadd.f32 %v909_v59, %v878_v58  ;;  %v879_v3 = vmax.f32 %v766_v1, 0.0  ;;  %v931_v5 = vadd.f32 %v930_v63, %v894_v62  ;;  %v895_v6 = vmax.f32 %v830_v4, 0.0 }
 0x11b   : > { %v911_v8 = vadd.f32 %v910_v2, %v879_v3  ;;  %v932_v10 = vadd.f32 %v931_v5, %v895_v6 }
 0x11d   : > { %v912_v12 = vadd.f32 %v911_v8, %v880_v7  ;;  %v4326_v13 = vpop.f32.mrb[8].mxu0  ;;  %v933_v15 = vadd.f32 %v932_v10, %v896_v9  ;;  %v4342_v16 = vpop.f32.mrb[8].mxu1 }
 0x11e   : > { %v779_v17 = vpop.f32.mrb[9].mxu0  ;;  %v843_v20 = vpop.f32.mrb[9].mxu1  ;;  %v884_v31 = vmax.f32 %v4326_v13, 0.0  ;;  %v900_v33 = vmax.f32 %v4342_v16, 0.0  ;;  %v963_v16 = vld [vmem:[%s5753_s2] sm:$0xff] (!%p3824_p12) }
 0x11f   : > { %v882_v18 = vmax.f32 %v779_v17, 0.0  ;;  %v913_v19 = vadd.f32 %v912_v12, %v881_v11  ;;  %v4327_v21 = vpop.f32.mrb[10].mxu0  ;;  %v898_v22 = vmax.f32 %v843_v20, 0.0  ;;  %v934_v23 = vadd.f32 %v933_v15, %v897_v14  ;;  %v4343_v24 = vpop.f32.mrb[10].mxu1  ;;  %v906_v12 = vld [vmem:[#allocation2] sm:$0x3] }
 0x120   : > { %v782_v25 = vpop.f32.mrb[11].mxu0  ;;  %v846_v28 = vpop.f32.mrb[11].mxu1  ;;  %v885_v35 = vmax.f32 %v4327_v21, 0.0  ;;  %v901_v38 = vmax.f32 %v4343_v24, 0.0  ;;  %v971_v17 = vld [vmem:[%s5753_s2 + $0x40] sm:$0xff] (!%p3824_p12)  ;;  %v972_v20 = vld [vmem:[%s5753_s2 + $0x48] sm:$0xff] (!%p3824_p12) }
 0x121   : > { %v914_v26 = vadd.f32 %v913_v19, %v882_v18  ;;  %v883_v27 = vmax.f32 %v782_v25, 0.0  ;;  %v935_v29 = vadd.f32 %v934_v23, %v898_v22  ;;  %v899_v30 = vmax.f32 %v846_v28, 0.0  ;;  %v964_v18 = vld [vmem:[%s5753_s2 + $0x8] sm:$0xff] (!%p3824_p12)  ;;  %v979_v22 = vld [vmem:[%s5753_s2 + $0x80] sm:$0xff] (!%p3824_p12) }
 0x122   : > { %v3826_v19 = vcombine.high (!%p3824_p12), %v963_v16, %v971_v17  ;;  %v3825_v21 = vcombine.low (!%p3824_p12), %v963_v16, %v971_v17  ;;  %v987_v23 = vld [vmem:[%s5753_s2 + $0xc0] sm:$0xff] (!%p3824_p12)  ;;  %v4673_v24 = vmov (!%p3824_p12), 0   ;;  %v3828_v25 = vcombine.high (!%p3824_p12), %v964_v18, %v972_v20  ;;  %v980_v28 = vld [vmem:[%s5753_s2 + $0x88] sm:$0xff] (!%p3824_p12)  ;;  %v965_v16 = vld [vmem:[%s5753_s2 + $0x10] sm:$0xff] (!%p3824_p12) }
 0x123   : > { %v915_v32 = vadd.f32 %v914_v26, %v883_v27  ;;  %v936_v34 = vadd.f32 %v935_v29, %v899_v30  ;;  %1763 = vmatprep.mubr.bf16.mxu0 (!%p3824_p12), %v4673_v24  ;;  %1804 = vmatprep.mubr.bf16.mxu1 (!%p3824_p12), %v4673_v24  ;;  %v3827_v26 = vcombine.low (!%p3824_p12), %v964_v18, %v972_v20  ;;  %v988_v29 = vld [vmem:[%s5753_s2 + $0xc8] sm:$0xff] (!%p3824_p12)  ;;  %v995_v30 = vld [vmem:[%s5753_s2 + $0x100] sm:$0xff] (!%p3824_p12)  ;;  %v973_v17 = vld [vmem:[%s5753_s2 + $0x50] sm:$0xff] (!%p3824_p12) }
 0x124   : > { %v3842_v27 = vcombine.high (!%p3824_p12), %v979_v22, %v987_v23  ;;  %1731 = vmatprep.subr.bf16.mxu0 (!%p3824_p12), %v3826_v19  ;;  %1772 = vmatprep.subr.bf16.mxu1 (!%p3824_p12), %v3828_v25  ;;  %v966_v19 = vld [vmem:[%s5753_s2 + $0x18] sm:$0xff] (!%p3824_p12) }
 0x125   : > { %v916_v36 = vadd.f32 %v915_v32, %v884_v31  ;;  %v4330_v37 = vpop.f32.mrb[12].mxu0  ;;  %v937_v39 = vadd.f32 %v936_v34, %v900_v33  ;;  %v4346_v40 = vpop.f32.mrb[12].mxu1  ;;  %v3844_v31 = vcombine.high (!%p3824_p12), %v980_v28, %v988_v29  ;;  %v1003_v32 = vld [vmem:[%s5753_s2 + $0x140] sm:$0xff] (!%p3824_p12)  ;;  %v996_v33 = vld [vmem:[%s5753_s2 + $0x108] sm:$0xff] (!%p3824_p12)  ;;  %1732 = vmatpush1.bf16.msra.mxu0 (!%p3824_p12), %v3825_v21  ;;  %1773 = vmatpush1.bf16.msra.mxu1 (!%p3824_p12), %v3827_v26  ;;  %v974_v20 = vld [vmem:[%s5753_s2 + $0x58] sm:$0xff] (!%p3824_p12) }
 0x126   : > { %v795_v41 = vpop.f32.mrb[13].mxu0  ;;  %v859_v44 = vpop.f32.mrb[13].mxu1  ;;  %v888_v55 = vmax.f32 %v4330_v37, 0.0  ;;  %v904_v57 = vmax.f32 %v4346_v40, 0.0  ;;  %v1004_v34 = vld [vmem:[%s5753_s2 + $0x148] sm:$0xff] (!%p3824_p12)  ;;  %1733 = vmatprep.subr.bf16.mxu0 (!%p3824_p12), %v3842_v27  ;;  %v3858_v37 = vcombine.high (!%p3824_p12), %v995_v30, %v1003_v32  ;;  %v1019_v40 = vld [vmem:[%s5753_s2 + $0x1c0] sm:$0xff] (!%p3824_p12)  ;;  %v3832_v25 = vcombine.high (!%p3824_p12), %v966_v19, %v974_v20 }
 0x127   : > { %v886_v42 = vmax.f32 %v795_v41, 0.0  ;;  %v917_v43 = vadd.f32 %v916_v36, %v885_v35  ;;  %v4331_v45 = vpop.f32.mrb[14].mxu0  ;;  %v902_v46 = vmax.f32 %v859_v44, 0.0  ;;  %v938_v47 = vadd.f32 %v937_v39, %v901_v38  ;;  %v4347_v48 = vpop.f32.mrb[14].mxu1  ;;  %1774 = vmatprep.subr.bf16.mxu1 (!%p3824_p12), %v3844_v31  ;;  %v1011_v39 = vld [vmem:[%s5753_s2 + $0x180] sm:$0xff] (!%p3824_p12)  ;;  %v1012_v41 = vld [vmem:[%s5753_s2 + $0x188] sm:$0xff] (!%p3824_p12) }
 0x128   : > { %v798_v49 = vpop.f32.mrb[15].mxu0  ;;  %v862_v52 = vpop.f32.mrb[15].mxu1  ;;  %v889_v59 = vmax.f32 %v4331_v45, 0.0  ;;  %v905_v61 = vmax.f32 %v4347_v48, 0.0  ;;  %v3841_v35 = vcombine.low (!%p3824_p12), %v979_v22, %v987_v23  ;;  %v3843_v36 = vcombine.low (!%p3824_p12), %v980_v28, %v988_v29  ;;  %v1035_v48 = vld [vmem:[%s5753_s2 + $0x240] sm:$0xff] (!%p3824_p12)  ;;  %v981_v26 = vld [vmem:[%s5753_s2 + $0x90] sm:$0xff] (!%p3824_p12) }
 0x129   : > { %v918_v50 = vadd.f32 %v917_v43, %v886_v42  ;;  %v887_v51 = vmax.f32 %v798_v49, 0.0  ;;  %v939_v53 = vadd.f32 %v938_v47, %v902_v46  ;;  %v903_v54 = vmax.f32 %v862_v52, 0.0  ;;  %v1020_v42 = vld [vmem:[%s5753_s2 + $0x1c8] sm:$0xff] (!%p3824_p12)  ;;  %v1027_v47 = vld [vmem:[%s5753_s2 + $0x200] sm:$0xff] (!%p3824_p12)  ;;  %v989_v27 = vld [vmem:[%s5753_s2 + $0xd0] sm:$0xff] (!%p3824_p12) }
 0x12a   : > { %v3860_v38 = vcombine.high (!%p3824_p12), %v996_v33, %v1004_v34  ;;  %1734 = vmatpush1.bf16.msra.mxu0 (!%p3824_p12), %v3841_v35  ;;  %v3857_v43 = vcombine.low (!%p3824_p12), %v995_v30, %v1003_v32  ;;  %1775 = vmatpush1.bf16.msra.mxu1 (!%p3824_p12), %v3843_v36  ;;  %v3859_v44 = vcombine.low (!%p3824_p12), %v996_v33, %v1004_v34  ;;  %v1028_v49 = vld [vmem:[%s5753_s2 + $0x208] sm:$0xff] (!%p3824_p12)  ;;  %v982_v29 = vld [vmem:[%s5753_s2 + $0x98] sm:$0xff] (!%p3824_p12)  ;;  %v997_v35 = vld [vmem:[%s5753_s2 + $0x110] sm:$0xff] (!%p3824_p12) }
 0x12b   : > { %v919_v56 = vadd.f32 %v918_v50, %v887_v51  ;;  %v940_v58 = vadd.f32 %v939_v53, %v903_v54  ;;  %1735 = vmatprep.subr.bf16.mxu0 (!%p3824_p12), %v3858_v37  ;;  %v3874_v45 = vcombine.high (!%p3824_p12), %v1011_v39, %v1019_v40  ;;  %v3876_v46 = vcombine.high (!%p3824_p12), %v1012_v41, %v1020_v42  ;;  %v1036_v50 = vld [vmem:[%s5753_s2 + $0x248] sm:$0xff] (!%p3824_p12)  ;;  %v990_v30 = vld [vmem:[%s5753_s2 + $0xd8] sm:$0xff] (!%p3824_p12)  ;;  %v1005_v36 = vld [vmem:[%s5753_s2 + $0x150] sm:$0xff] (!%p3824_p12) }
 0x12c   : > { %1776 = vmatprep.subr.bf16.mxu1 (!%p3824_p12), %v3860_v38  ;;  %v3873_v51 = vcombine.low (!%p3824_p12), %v1011_v39, %v1019_v40  ;;  %v3875_v52 = vcombine.low (!%p3824_p12), %v1012_v41, %v1020_v42  ;;  %v3890_v53 = vcombine.high (!%p3824_p12), %v1027_v47, %v1035_v48  ;;  %v3892_v54 = vcombine.high (!%p3824_p12), %v1028_v49, %v1036_v50  ;;  %v998_v37 = vld [vmem:[%s5753_s2 + $0x118] sm:$0xff] (!%p3824_p12) }
 0x12d   : > { %v920_v60 = vadd.f32 %v919_v56, %v888_v55  ;;  %v941_v62 = vadd.f32 %v940_v58, %v904_v57  ;;  %v1043_v55 = vld [vmem:[%s5753_s2 + $0x280] sm:$0xff] (!%p3824_p12)  ;;  %v1044_v57 = vld [vmem:[%s5753_s2 + $0x288] sm:$0xff] (!%p3824_p12)  ;;  %v3830_v23 = vcombine.high (!%p3824_p12), %v965_v16, %v973_v17  ;;  %v3829_v31 = vcombine.low (!%p3824_p12), %v965_v16, %v973_v17  ;;  %v1006_v38 = vld [vmem:[%s5753_s2 + $0x158] sm:$0xff] (!%p3824_p12) }
 0x12e   : > { %1736 = vmatpush1.bf16.msra.mxu0 (!%p3824_p12), %v3857_v43  ;;  %1777 = vmatpush1.bf16.msra.mxu1 (!%p3824_p12), %v3859_v44  ;;  %v1051_v56 = vld [vmem:[%s5753_s2 + $0x2c0] sm:$0xff] (!%p3824_p12)  ;;  %v1052_v58 = vld [vmem:[%s5753_s2 + $0x2c8] sm:$0xff] (!%p3824_p12)  ;;  %v3831_v32 = vcombine.low (!%p3824_p12), %v966_v19, %v974_v20  ;;  %v3846_v33 = vcombine.high (!%p3824_p12), %v981_v26, %v989_v27  ;;  %v3848_v34 = vcombine.high (!%p3824_p12), %v982_v29, %v990_v30  ;;  %v1013_v43 = vld [vmem:[%s5753_s2 + $0x190] sm:$0xff] (!%p3824_p12) }
 0x12f   : > { %v921_v63 = vadd.f32 %v920_v60, %v889_v59  ;;  %v942_v0 = vadd.f32 %v941_v62, %v905_v61  ;;  %1737 = vmatprep.subr.bf16.mxu0 (!%p3824_p12), %v3874_v45  ;;  %1778 = vmatprep.subr.bf16.mxu1 (!%p3824_p12), %v3876_v46  ;;  %v3889_v59 = vcombine.low (!%p3824_p12), %v1027_v47, %v1035_v48  ;;  %v1021_v44 = vld [vmem:[%s5753_s2 + $0x1d0] sm:$0xff] (!%p3824_p12)  ;;  %v1014_v45 = vld [vmem:[%s5753_s2 + $0x198] sm:$0xff] (!%p3824_p12)  ;;  %v967_v16 = vld [vmem:[%s5753_s2 + $0x20] sm:$0xff] (!%p3824_p12) }
 0x130   : > { %v3891_v60 = vcombine.low (!%p3824_p12), %v1028_v49, %v1036_v50  ;;  %v3906_v61 = vcombine.high (!%p3824_p12), %v1043_v55, %v1051_v56  ;;  %v3908_v62 = vcombine.high (!%p3824_p12), %v1044_v57, %v1052_v58  ;;  %v3845_v39 = vcombine.low (!%p3824_p12), %v981_v26, %v989_v27  ;;  %v1022_v46 = vld [vmem:[%s5753_s2 + $0x1d8] sm:$0xff] (!%p3824_p12)  ;;  %v975_v19 = vld [vmem:[%s5753_s2 + $0x60] sm:$0xff] (!%p3824_p12) }
 0x131   : > { %v922_v1 = vrot.slane %v921_v63, 4  ;;  %v943_v2 = vrot.slane %v942_v0, 4  ;;  %v3847_v40 = vcombine.low (!%p3824_p12), %v982_v29, %v990_v30  ;;  %v3862_v41 = vcombine.high (!%p3824_p12), %v997_v35, %v1005_v36  ;;  %v991_v29 = vld [vmem:[%s5753_s2 + $0xe0] sm:$0xff] (!%p3824_p12) }
 0x132   : > { %1738 = vmatpush1.bf16.msra.mxu0 (!%p3824_p12), %v3873_v51  ;;  %1779 = vmatpush1.bf16.msra.mxu1 (!%p3824_p12), %v3875_v52  ;;  %v3864_v42 = vcombine.high (!%p3824_p12), %v998_v37, %v1006_v38  ;;  %v3861_v47 = vcombine.low (!%p3824_p12), %v997_v35, %v1005_v36  ;;  %v3863_v48 = vcombine.low (!%p3824_p12), %v998_v37, %v1006_v38  ;;  %v1029_v51 = vld [vmem:[%s5753_s2 + $0x210] sm:$0xff] (!%p3824_p12)  ;;  %v1007_v37 = vld [vmem:[%s5753_s2 + $0x160] sm:$0xff] (!%p3824_p12) }
 0x133   : > { %v923_v3 = vadd.f32 %v922_v1, %v921_v63  ;;  %v944_v4 = vadd.f32 %v943_v2, %v942_v0  ;;  %1739 = vmatprep.subr.bf16.mxu0 (!%p3824_p12), %v3890_v53  ;;  %1780 = vmatprep.subr.bf16.mxu1 (!%p3824_p12), %v3892_v54  ;;  %v1059_v63 = vld [vmem:[%s5753_s2 + $0x300] sm:$0xff] (!%p3824_p12)  ;;  %v1060_v1 = vld [vmem:[%s5753_s2 + $0x308] sm:$0xff] (!%p3824_p12)  ;;  %v3878_v49 = vcombine.high (!%p3824_p12), %v1013_v43, %v1021_v44  ;;  %v1037_v52 = vld [vmem:[%s5753_s2 + $0x250] sm:$0xff] (!%p3824_p12) }
 0x134   : > { %v1067_v0 = vld [vmem:[%s5753_s2 + $0x340] sm:$0xff] (!%p3824_p12)  ;;  %v1068_v2 = vld [vmem:[%s5753_s2 + $0x348] sm:$0xff] (!%p3824_p12)  ;;  %v3880_v50 = vcombine.high (!%p3824_p12), %v1014_v45, %v1022_v46  ;;  %v1030_v53 = vld [vmem:[%s5753_s2 + $0x218] sm:$0xff] (!%p3824_p12)  ;;  %v3834_v27 = vcombine.high (!%p3824_p12), %v967_v16, %v975_v19 }
 0x135   : > { %v924_v5 = vrot.slane %v923_v3, 2  ;;  %v945_v6 = vrot.slane %v944_v4, 2  ;;  %v1038_v54 = vld [vmem:[%s5753_s2 + $0x258] sm:$0xff] (!%p3824_p12) }
 0x136   : > { %1740 = vmatpush1.bf16.msra.mxu0 (!%p3824_p12), %v3889_v59  ;;  %1781 = vmatpush1.bf16.msra.mxu1 (!%p3824_p12), %v3891_v60  ;;  %v1053_v59 = vld [vmem:[%s5753_s2 + $0x2d0] sm:$0xff] (!%p3824_p12)  ;;  %v3896_v60 = vcombine.high (!%p3824_p12), %v1030_v53, %v1038_v54 }
 0x137   : > { %v925_v7 = vadd.f32 %v924_v5, %v923_v3  ;;  %v946_v8 = vadd.f32 %v945_v6, %v944_v4  ;;  %v3905_v3 = vcombine.low (!%p3824_p12), %v1043_v55, %v1051_v56  ;;  %1741 = vmatprep.subr.bf16.mxu0 (!%p3824_p12), %v3906_v61  ;;  %v3907_v4 = vcombine.low (!%p3824_p12), %v1044_v57, %v1052_v58  ;;  %v1045_v56 = vld [vmem:[%s5753_s2 + $0x290] sm:$0xff] (!%p3824_p12)  ;;  %v1046_v61 = vld [vmem:[%s5753_s2 + $0x298] sm:$0xff] (!%p3824_p12) }
 0x138   : > { %v3922_v5 = vcombine.high (!%p3824_p12), %v1059_v63, %v1067_v0  ;;  %1782 = vmatprep.subr.bf16.mxu1 (!%p3824_p12), %v3908_v62  ;;  %v3924_v6 = vcombine.high (!%p3824_p12), %v1060_v1, %v1068_v2  ;;  %v3877_v55 = vcombine.low (!%p3824_p12), %v1013_v43, %v1021_v44  ;;  %v3879_v57 = vcombine.low (!%p3824_p12), %v1014_v45, %v1022_v46  ;;  %v1054_v62 = vld [vmem:[%s5753_s2 + $0x2d8] sm:$0xff] (!%p3824_p12)  ;;  %v1023_v43 = vld [vmem:[%s5753_s2 + $0x1e0] sm:$0xff] (!%p3824_p12)  ;;  %v1016_v46 = vld [vmem:[%s5753_s2 + $0x1a8] sm:$0xff] (!%p3824_p12) }
 0x139   : > { %v926_v9 = vrot.slane %v925_v7, 1  ;;  %v947_v10 = vrot.slane %v946_v8, 1  ;;  %v3894_v58 = vcombine.high (!%p3824_p12), %v1029_v51, %v1037_v52 }
 0x13a   : > { %959 = sbr.rel (%p3824_p12) target bundleno = 1404 (0x57c), region = 109  ;;  %1742 = vmatpush1.bf16.msra.mxu0 (!%p3824_p12), %v3905_v3  ;;  %1783 = vmatpush1.bf16.msra.mxu1 (!%p3824_p12), %v3907_v4  ;;  %v1069_v3 = vld [vmem:[%s5753_s2 + $0x350] sm:$0xff] (!%p3824_p12)  ;;  %v3912_v4 = vcombine.high (!%p3824_p12), %v1046_v61, %v1054_v62 }
 0x13b   : > { %v927_v11 = vadd.f32 %v926_v9, %v925_v7  ;;  %v948_v13 = vadd.f32 %v947_v10, %v946_v8  ;;  %v1075_v7 = vld [vmem:[%s5753_s2 + $0x380] sm:$0xff] (!%p3824_p12)  ;;  %v1076_v9 = vld [vmem:[%s5753_s2 + $0x388] sm:$0xff] (!%p3824_p12)  ;;  %1743 = vmatprep.subr.bf16.mxu0 (!%p3824_p12), %v3922_v5  ;;  %1784 = vmatprep.subr.bf16.mxu1 (!%p3824_p12), %v3924_v6  ;;  %v1062_v5 = vld [vmem:[%s5753_s2 + $0x318] sm:$0xff] (!%p3824_p12) }
 0x13c   : > { %v1083_v8 = vld [vmem:[%s5753_s2 + $0x3c0] sm:$0xff] (!%p3824_p12)  ;;  %v1084_v10 = vld [vmem:[%s5753_s2 + $0x3c8] sm:$0xff] (!%p3824_p12)  ;;  %v1070_v6 = vld [vmem:[%s5753_s2 + $0x358] sm:$0xff] (!%p3824_p12) }
 0x13d   : > { %v952_v14 = vsel %vm951_vm2, %v948_v13, %v927_v11  ;;  %v3921_v11 = vcombine.low (!%p3824_p12), %v1059_v63, %v1067_v0  ;;  %v3923_v13 = vcombine.low (!%p3824_p12), %v1060_v1, %v1068_v2  ;;  %v3937_v21 = vcombine.low (!%p3824_p12), %v1075_v7, %v1083_v8  ;;  %v1061_v0 = vld [vmem:[%s5753_s2 + $0x310] sm:$0xff] (!%p3824_p12) }
 0x13e   : > { %v954_v15 = vadd.f32 %v952_v14, %v906_v12  ;;  %v3938_v14 = vcombine.high (!%p3824_p12), %v1075_v7, %v1083_v8  ;;  %v3939_v22 = vcombine.low (!%p3824_p12), %v1076_v9, %v1084_v10  ;;  %v3893_v63 = vcombine.low (!%p3824_p12), %v1029_v51, %v1037_v52  ;;  %v1077_v8 = vld [vmem:[%s5753_s2 + $0x390] sm:$0xff] (!%p3824_p12)  ;;  %v1039_v51 = vld [vmem:[%s5753_s2 + $0x260] sm:$0xff] (!%p3824_p12) }
 0x13f   : > { %1744 = vmatpush1.bf16.msra.mxu0 (!%p3824_p12), %v3921_v11  ;;  %1785 = vmatpush1.bf16.msra.mxu1 (!%p3824_p12), %v3923_v13  ;;  %v3895_v1 = vcombine.low (!%p3824_p12), %v1030_v53, %v1038_v54  ;;  %v3910_v2 = vcombine.high (!%p3824_p12), %v1045_v56, %v1053_v59  ;;  %v3909_v7 = vcombine.low (!%p3824_p12), %v1045_v56, %v1053_v59  ;;  %v1085_v11 = vld [vmem:[%s5753_s2 + $0x3d0] sm:$0xff] (!%p3824_p12)  ;;  %v1078_v13 = vld [vmem:[%s5753_s2 + $0x398] sm:$0xff] (!%p3824_p12)  ;;  %v1032_v54 = vld [vmem:[%s5753_s2 + $0x228] sm:$0xff] (!%p3824_p12) }
 0x140   : > { %955 = vst [vmem:[#allocation2] sm:$0x3] %v954_v15  ;;  %v3940_v15 = vcombine.high (!%p3824_p12), %v1076_v9, %v1084_v10  ;;  %1745 = vmatprep.subr.bf16.mxu0 (!%p3824_p12), %v3938_v14  ;;  %v3911_v9 = vcombine.low (!%p3824_p12), %v1046_v61, %v1054_v62  ;;  %v3926_v10 = vcombine.high (!%p3824_p12), %v1061_v0, %v1069_v3  ;;  %v1086_v14 = vld [vmem:[%s5753_s2 + $0x3d8] sm:$0xff] (!%p3824_p12)  ;;  %v1055_v59 = vld [vmem:[%s5753_s2 + $0x2e0] sm:$0xff] (!%p3824_p12)  ;;  %v1048_v62 = vld [vmem:[%s5753_s2 + $0x2a8] sm:$0xff] (!%p3824_p12) }
 0x141   : > { %v3927_v17 = vcombine.low %v1062_v5, %v1070_v6  ;;  %v3944_v20 = vcombine.high %v1078_v13, %v1086_v14  ;;  %v3943_v26 = vcombine.low %v1078_v13, %v1086_v14  ;;  %v1080_v14 = vld [vmem:[%s5753_s2 + $0x3a8] sm:$0xff] }
 0x142   : > { %1786 = vmatprep.subr.bf16.mxu1 %v3940_v15  ;;  %v3925_v15 = vcombine.low %v1061_v0, %v1069_v3  ;;  %v1071_v3 = vld [vmem:[%s5753_s2 + $0x360] sm:$0xff] }
 0x143   : > { %1746 = vmatpush1.bf16.msra.mxu0 %v3937_v21  ;;  %1787 = vmatpush1.bf16.msra.mxu1 %v3939_v22  ;;  %v968_v21 = vld [vmem:[%s5753_s2 + $0x28] sm:$0xff] }
 0x144   : > { %1813 = vmatprep.subr.bf16.mxu0 %v3830_v23  ;;  %1854 = vmatprep.subr.bf16.mxu1 %v3832_v25  ;;  %v976_v22 = vld [vmem:[%s5753_s2 + $0x68] sm:$0xff]  ;;  %v3941_v23 = vcombine.low %v1077_v8, %v1085_v11  ;;  %v983_v25 = vld [vmem:[%s5753_s2 + $0xa0] sm:$0xff] }
 0x145   : > { %v3836_v30 = vcombine.high %v968_v21, %v976_v22  ;;  %v3835_v35 = vcombine.low %v968_v21, %v976_v22  ;;  %v3850_v36 = vcombine.high %v983_v25, %v991_v29  ;;  %v970_v22 = vld [vmem:[%s5753_s2 + $0x38] sm:$0xff] }
 0x147   : > { %v960_v12 = vld [vmem:[#allocation2] sm:$0x3] }
 0x148   : > { %v961_v18 = vmul.f32 0.00390625, %v960_v12  ;;  %v3928_v12 = vcombine.high %v1062_v5, %v1070_v6  ;;  %v1064_v6 = vld [vmem:[%s5753_s2 + $0x328] sm:$0xff] }
 0x14a   : > { %v4977_v28 = vpack.c.bf16 %v961_v18, %v961_v18  ;;  %v3942_v18 = vcombine.high %v1077_v8, %v1085_v11  ;;  %v1087_v11 = vld [vmem:[%s5753_s2 + $0x3e0] sm:$0xff] }
 0x14c   : > { %1764 = vmatmul.mubr.bf16.vlgmr.msra.gmra.mrb[0].mxu0 %v4977_v28  ;;  %1805 = vmatmul.mubr.bf16.vlgmr.msra.gmra.mrb[0].mxu1 %v4977_v28 }
 0x14d   : > { %1814 = vmatpush1.bf16.msra.mxu0 %v3829_v31  ;;  %1855 = vmatpush1.bf16.msra.mxu1 %v3831_v32  ;;  %v984_v31 = vld [vmem:[%s5753_s2 + $0xa8] sm:$0xff] }
 0x14e   : > { %1815 = vmatprep.subr.bf16.mxu0 %v3846_v33  ;;  %1856 = vmatprep.subr.bf16.mxu1 %v3848_v34  ;;  %v992_v32 = vld [vmem:[%s5753_s2 + $0xe8] sm:$0xff]  ;;  %v3833_v33 = vcombine.low %v967_v16, %v975_v19  ;;  %v999_v34 = vld [vmem:[%s5753_s2 + $0x120] sm:$0xff]  ;;  %v977_v19 = vld [vmem:[%s5753_s2 + $0x70] sm:$0xff] }
 0x14f   : > { %1845 = vmatprep.mubr.bf16.mxu0 %v4673_v24  ;;  %1886 = vmatprep.mubr.bf16.mxu1 %v4673_v24  ;;  %v3852_v38 = vcombine.high %v984_v31, %v992_v32  ;;  %v3851_v44 = vcombine.low %v984_v31, %v992_v32  ;;  %v3866_v45 = vcombine.high %v999_v34, %v1007_v37  ;;  %v986_v32 = vld [vmem:[%s5753_s2 + $0xb8] sm:$0xff] }
 0x151   : > { %1816 = vmatpush1.bf16.msra.mxu0 %v3845_v39  ;;  %1857 = vmatpush1.bf16.msra.mxu1 %v3847_v40  ;;  %v1000_v39 = vld [vmem:[%s5753_s2 + $0x128] sm:$0xff] }
 0x152   : > { %1817 = vmatprep.subr.bf16.mxu0 %v3862_v41  ;;  %1858 = vmatprep.subr.bf16.mxu1 %v3864_v42  ;;  %v1008_v40 = vld [vmem:[%s5753_s2 + $0x168] sm:$0xff]  ;;  %v3849_v41 = vcombine.low %v983_v25, %v991_v29  ;;  %v1015_v42 = vld [vmem:[%s5753_s2 + $0x1a0] sm:$0xff]  ;;  %v993_v29 = vld [vmem:[%s5753_s2 + $0xf0] sm:$0xff] }
 0x153   : > { %v3867_v52 = vcombine.low %v1000_v39, %v1008_v40  ;;  %v3882_v53 = vcombine.high %v1015_v42, %v1023_v43 }
 0x155   : > { %1818 = vmatpush1.bf16.msra.mxu0 %v3861_v47  ;;  %1859 = vmatpush1.bf16.msra.mxu1 %v3863_v48  ;;  %v3868_v47 = vcombine.high %v1000_v39, %v1008_v40  ;;  %v1024_v48 = vld [vmem:[%s5753_s2 + $0x1e8] sm:$0xff]  ;;  %v1002_v40 = vld [vmem:[%s5753_s2 + $0x138] sm:$0xff] }
 0x156   : > { %1819 = vmatprep.subr.bf16.mxu0 %v3878_v49  ;;  %1860 = vmatprep.subr.bf16.mxu1 %v3880_v50  ;;  %v3865_v49 = vcombine.low %v999_v34, %v1007_v37  ;;  %v1031_v50 = vld [vmem:[%s5753_s2 + $0x220] sm:$0xff]  ;;  %v3884_v56 = vcombine.high %v1016_v46, %v1024_v48  ;;  %v1009_v37 = vld [vmem:[%s5753_s2 + $0x170] sm:$0xff] }
 0x157   : > { %v3898_v61 = vcombine.high %v1031_v50, %v1039_v51 }
 0x159   : > { %1820 = vmatpush1.bf16.msra.mxu0 %v3877_v55  ;;  %1861 = vmatpush1.bf16.msra.mxu1 %v3879_v57  ;;  %v1040_v55 = vld [vmem:[%s5753_s2 + $0x268] sm:$0xff]  ;;  %v3881_v57 = vcombine.low %v1015_v42, %v1023_v43 }
 0x15a   : > { %1821 = vmatprep.subr.bf16.mxu0 %v3894_v58  ;;  %1862 = vmatprep.subr.bf16.mxu1 %v3896_v60  ;;  %v1047_v58 = vld [vmem:[%s5753_s2 + $0x2a0] sm:$0xff]  ;;  %v3883_v60 = vcombine.low %v1016_v46, %v1024_v48  ;;  %v3900_v0 = vcombine.high %v1032_v54, %v1040_v55  ;;  %v1018_v48 = vld [vmem:[%s5753_s2 + $0x1b8] sm:$0xff] }
 0x15b   : > { %v3914_v5 = vcombine.high %v1047_v58, %v1055_v59 }
 0x15d   : > { %1822 = vmatpush1.bf16.msra.mxu0 %v3893_v63  ;;  %1863 = vmatpush1.bf16.msra.mxu1 %v3895_v1  ;;  %v1056_v63 = vld [vmem:[%s5753_s2 + $0x2e8] sm:$0xff]  ;;  %v3897_v1 = vcombine.low %v1031_v50, %v1039_v51 }
 0x15e   : > { %1823 = vmatprep.subr.bf16.mxu0 %v3910_v2  ;;  %1864 = vmatprep.subr.bf16.mxu1 %v3912_v4  ;;  %v1063_v2 = vld [vmem:[%s5753_s2 + $0x320] sm:$0xff]  ;;  %v3899_v4 = vcombine.low %v1032_v54, %v1040_v55  ;;  %v3916_v8 = vcombine.high %v1048_v62, %v1056_v63 }
 0x15f   : > { %v3930_v13 = vcombine.high %v1063_v2, %v1071_v3 }
 0x161   : > { %1824 = vmatpush1.bf16.msra.mxu0 %v3909_v7  ;;  %1865 = vmatpush1.bf16.msra.mxu1 %v3911_v9  ;;  %v1072_v7 = vld [vmem:[%s5753_s2 + $0x368] sm:$0xff]  ;;  %v3913_v9 = vcombine.low %v1047_v58, %v1055_v59  ;;  %v1049_v59 = vld [vmem:[%s5753_s2 + $0x2b0] sm:$0xff] }
 0x162   : > { %1825 = vmatprep.subr.bf16.mxu0 %v3926_v10  ;;  %1866 = vmatprep.subr.bf16.mxu1 %v3928_v12  ;;  %v1079_v10 = vld [vmem:[%s5753_s2 + $0x3a0] sm:$0xff]  ;;  %v3915_v12 = vcombine.low %v1048_v62, %v1056_v63  ;;  %v3932_v16 = vcombine.high %v1064_v6, %v1072_v7  ;;  %v1050_v63 = vld [vmem:[%s5753_s2 + $0x2b8] sm:$0xff] }
 0x163   : > { %v3946_v21 = vcombine.high %v1079_v10, %v1087_v11 }
 0x165   : > { %1826 = vmatpush1.bf16.msra.mxu0 %v3925_v15  ;;  %1867 = vmatpush1.bf16.msra.mxu1 %v3927_v17  ;;  %v1088_v15 = vld [vmem:[%s5753_s2 + $0x3e8] sm:$0xff]  ;;  %v3929_v17 = vcombine.low %v1063_v2, %v1071_v3  ;;  %v1065_v3 = vld [vmem:[%s5753_s2 + $0x330] sm:$0xff] }
 0x166   : > { %1827 = vmatprep.subr.bf16.mxu0 %v3942_v18  ;;  %1868 = vmatprep.subr.bf16.mxu1 %v3944_v20  ;;  %v969_v18 = vld [vmem:[%s5753_s2 + $0x30] sm:$0xff]  ;;  %v3931_v20 = vcombine.low %v1064_v6, %v1072_v7  ;;  %v3948_v25 = vcombine.high %v1080_v14, %v1088_v15  ;;  %v1066_v7 = vld [vmem:[%s5753_s2 + $0x338] sm:$0xff] }
 0x167   : > { %v3838_v31 = vcombine.high %v969_v18, %v977_v19 }
 0x169   : > { %1828 = vmatpush1.bf16.msra.mxu0 %v3941_v23  ;;  %1869 = vmatpush1.bf16.msra.mxu1 %v3943_v26  ;;  %v978_v23 = vld [vmem:[%s5753_s2 + $0x78] sm:$0xff]  ;;  %v3945_v26 = vcombine.low %v1079_v10, %v1087_v11 }
 0x16a   : > { %1895 = vmatprep.subr.bf16.mxu0 %v3834_v27  ;;  %1936 = vmatprep.subr.bf16.mxu1 %v3836_v30  ;;  %v985_v27 = vld [vmem:[%s5753_s2 + $0xb0] sm:$0xff]  ;;  %v3947_v30 = vcombine.low %v1080_v14, %v1088_v15  ;;  %v3840_v34 = vcombine.high %v970_v22, %v978_v23 }
 0x16b   : > { %v3854_v39 = vcombine.high %v985_v27, %v993_v29  ;;  %v3853_v43 = vcombine.low %v985_v27, %v993_v29  ;;  %v1081_v14 = vld [vmem:[%s5753_s2 + $0x3b0] sm:$0xff]  ;;  %v4470_v27 = vld [vmem:[%s5754_s3] sm:$0xff]  }
 0x16c   : > { %1846 = vmatmul.mubr.bf16.vlgmr.msra.gmra.mrb[4].mxu0 %v4977_v28  ;;  %1887 = vmatmul.mubr.bf16.vlgmr.msra.gmra.mrb[4].mxu1 %v4977_v28  ;;  %v1089_v15 = vld [vmem:[%s5753_s2 + $0x3f0] sm:$0xff]  ;;  %v4471_v29 = vld [vmem:[%s5754_s3 + $0x80] sm:$0xff]  }
 0x16d   : > { %1896 = vmatpush1.bf16.msra.mxu0 %v3833_v33  ;;  %1937 = vmatpush1.bf16.msra.mxu1 %v3835_v35  ;;  %v994_v33 = vld [vmem:[%s5753_s2 + $0xf8] sm:$0xff]  ;;  %v3837_v35 = vcombine.low %v969_v18, %v977_v19 }
 0x16e   : > { %1897 = vmatprep.subr.bf16.mxu0 %v3850_v36  ;;  %1938 = vmatprep.subr.bf16.mxu1 %v3852_v38  ;;  %v1001_v36 = vld [vmem:[%s5753_s2 + $0x130] sm:$0xff]  ;;  %v3839_v38 = vcombine.low %v970_v22, %v978_v23  ;;  %v3856_v42 = vcombine.high %v986_v32, %v994_v33  ;;  %v3855_v46 = vcombine.low %v986_v32, %v994_v33  ;;  %v4474_v32 = vld [vmem:[%s5754_s3 + $0x8] sm:$0xff]  }
 0x16f   : > { %1927 = vmatprep.mubr.bf16.mxu0 %v4673_v24  ;;  %1968 = vmatprep.mubr.bf16.mxu1 %v4673_v24  ;;  %v3869_v51 = vcombine.low %v1001_v36, %v1009_v37  ;;  %v3949_v22 = vcombine.low %v1081_v14, %v1089_v15  ;;  %v4475_v33 = vld [vmem:[%s5754_s3 + $0x88] sm:$0xff]  }
 0x171   : > { %1898 = vmatpush1.bf16.msra.mxu0 %v3849_v41  ;;  %1939 = vmatpush1.bf16.msra.mxu1 %v3851_v44  ;;  %v1010_v41 = vld [vmem:[%s5753_s2 + $0x178] sm:$0xff]  ;;  %v1017_v44 = vld [vmem:[%s5753_s2 + $0x1b0] sm:$0xff] }
 0x172   : > { %1899 = vmatprep.subr.bf16.mxu0 %v3866_v45  ;;  %1940 = vmatprep.subr.bf16.mxu1 %v3868_v47  ;;  %v1025_v45 = vld [vmem:[%s5753_s2 + $0x1f0] sm:$0xff]  ;;  %v3870_v47 = vcombine.high %v1001_v36, %v1009_v37  ;;  %v3872_v50 = vcombine.high %v1002_v40, %v1010_v41  ;;  %v3871_v54 = vcombine.low %v1002_v40, %v1010_v41  ;;  %v4480_v37 = vld [vmem:[%s5754_s3 + $0x58] sm:$0xff]   ;;  %v4484_v41 = vld [vmem:[%s5754_s3 + $0x60] sm:$0xff]  }
 0x173   : > { %v3886_v55 = vcombine.high %v1017_v44, %v1025_v45  ;;  %v3885_v58 = vcombine.low %v1017_v44, %v1025_v45  ;;  %v4478_v36 = vld [vmem:[%s5754_s3 + $0x10] sm:$0xff]   ;;  %v4483_v40 = vld [vmem:[%s5754_s3 + $0x98] sm:$0xff]   ;;  %v4487_v44 = vld [vmem:[%s5754_s3 + $0xa0] sm:$0xff]  }
 0x174   : > { %v4488_v45 = vld [vmem:[%s5754_s3 + $0x68] sm:$0xff]  }
 0x175   : > { %1900 = vmatpush1.bf16.msra.mxu0 %v3865_v49  ;;  %1941 = vmatpush1.bf16.msra.mxu1 %v3867_v52  ;;  %v1026_v49 = vld [vmem:[%s5753_s2 + $0x1f8] sm:$0xff]  ;;  %v1033_v52 = vld [vmem:[%s5753_s2 + $0x230] sm:$0xff] }
 0x176   : > { %1901 = vmatprep.subr.bf16.mxu0 %v3882_v53  ;;  %1942 = vmatprep.subr.bf16.mxu1 %v3884_v56  ;;  %v1041_v53 = vld [vmem:[%s5753_s2 + $0x270] sm:$0xff]  ;;  %v1034_v56 = vld [vmem:[%s5753_s2 + $0x238] sm:$0xff] }
 0x177   : > { %v3902_v62 = vcombine.high %v1033_v52, %v1041_v53  ;;  %v3901_v2 = vcombine.low %v1033_v52, %v1041_v53  ;;  %v4495_v52 = vld [vmem:[%s5754_s3 + $0xb0] sm:$0xff]   ;;  %v4496_v53 = vld [vmem:[%s5754_s3 + $0x78] sm:$0xff]  }
 0x179   : > { %1902 = vmatpush1.bf16.msra.mxu0 %v3881_v57  ;;  %1943 = vmatpush1.bf16.msra.mxu1 %v3883_v60  ;;  %v3888_v57 = vcombine.high %v1018_v48, %v1026_v49  ;;  %v1057_v60 = vld [vmem:[%s5753_s2 + $0x2f0] sm:$0xff] }
 0x17a   : > { %1903 = vmatprep.subr.bf16.mxu0 %v3898_v61  ;;  %1944 = vmatprep.subr.bf16.mxu1 %v3900_v0  ;;  %v3887_v61 = vcombine.low %v1018_v48, %v1026_v49  ;;  %v1058_v0 = vld [vmem:[%s5753_s2 + $0x2f8] sm:$0xff]  ;;  %v3918_v6 = vcombine.high %v1049_v59, %v1057_v60  ;;  %v3917_v10 = vcombine.low %v1049_v59, %v1057_v60  ;;  %v4491_v48 = vld [vmem:[%s5754_s3 + $0xa8] sm:$0xff]   ;;  %v4492_v49 = vld [vmem:[%s5754_s3 + $0x70] sm:$0xff]  }
 0x17b   : > { %v3919_v11 = vcombine.low %v1050_v63, %v1058_v0 }
 0x17d   : > { %1904 = vmatpush1.bf16.msra.mxu0 %v3897_v1  ;;  %1945 = vmatpush1.bf16.msra.mxu1 %v3899_v4  ;;  %v1073_v4 = vld [vmem:[%s5753_s2 + $0x370] sm:$0xff] }
 0x17e   : > { %1905 = vmatprep.subr.bf16.mxu0 %v3914_v5  ;;  %1946 = vmatprep.subr.bf16.mxu1 %v3916_v8  ;;  %v1074_v8 = vld [vmem:[%s5753_s2 + $0x378] sm:$0xff]  ;;  %v3933_v18 = vcombine.low %v1065_v3, %v1073_v4 }
 0x17f   : > { %v3935_v19 = vcombine.low %v1066_v7, %v1074_v8 }
 0x181   : > { %1906 = vmatpush1.bf16.msra.mxu0 %v3913_v9  ;;  %1947 = vmatpush1.bf16.msra.mxu1 %v3915_v12  ;;  %v3920_v9 = vcombine.high %v1050_v63, %v1058_v0  ;;  %v3934_v12 = vcombine.high %v1065_v3, %v1073_v4 }
 0x182   : > { %1907 = vmatprep.subr.bf16.mxu0 %v3930_v13  ;;  %1948 = vmatprep.subr.bf16.mxu1 %v3932_v16  ;;  %v3936_v13 = vcombine.high %v1066_v7, %v1074_v8  ;;  %v1082_v16 = vld [vmem:[%s5753_s2 + $0x3b8] sm:$0xff]  ;;  %v4504_v7 = vld [vmem:[%s5754_s3 + $0x148] sm:$0xff]  }
 0x185   : > { %1908 = vmatpush1.bf16.msra.mxu0 %v3929_v17  ;;  %1949 = vmatpush1.bf16.msra.mxu1 %v3931_v20  ;;  %v1090_v17 = vld [vmem:[%s5753_s2 + $0x3f8] sm:$0xff]  ;;  %v3950_v20 = vcombine.high %v1081_v14, %v1089_v15  ;;  %v4510_v14 = vld [vmem:[%s5754_s3 + $0x110] sm:$0xff]  }
 0x186   : > { %1909 = vmatprep.subr.bf16.mxu0 %v3946_v21  ;;  %1950 = vmatprep.subr.bf16.mxu1 %v3948_v25  ;;  %v3952_v21 = vcombine.high %v1082_v16, %v1090_v17  ;;  %v3951_v23 = vcombine.low %v1082_v16, %v1090_v17  ;;  %v4468_v25 = vld [vmem:[%s5754_s3 + $0x40] sm:$0xff]   ;;  %v4511_v15 = vld [vmem:[%s5754_s3 + $0x190] sm:$0xff]   ;;  %v4512_v16 = vld [vmem:[%s5754_s3 + $0x158] sm:$0xff]  }
 0x187   : > { %v4513_v17 = vld [vmem:[%s5754_s3 + $0x1d8] sm:$0xff]  }
 0x189   : > { %1910 = vmatpush1.bf16.msra.mxu0 %v3945_v26  ;;  %1951 = vmatpush1.bf16.msra.mxu1 %v3947_v30  ;;  %v4469_v26 = vld [vmem:[%s5754_s3 + $0xc0] sm:$0xff]   ;;  %v4472_v30 = vld [vmem:[%s5754_s3 + $0x48] sm:$0xff]  }
 0x18a   : > { %1977 = vmatprep.subr.bf16.mxu0 %v3838_v31  ;;  %2018 = vmatprep.subr.bf16.mxu1 %v3840_v34  ;;  %v4473_v31 = vld [vmem:[%s5754_s3 + $0xc8] sm:$0xff]   ;;  %v4476_v34 = vld [vmem:[%s5754_s3 + $0x50] sm:$0xff]  }
 0x18c   : > { %1928 = vmatmul.mubr.bf16.vlgmr.msra.gmra.mrb[8].mxu0 %v4977_v28  ;;  %1969 = vmatmul.mubr.bf16.vlgmr.msra.gmra.mrb[8].mxu1 %v4977_v28 }
 0x18d   : > { %1978 = vmatpush1.bf16.msra.mxu0 %v3837_v35  ;;  %2019 = vmatpush1.bf16.msra.mxu1 %v3839_v38  ;;  %v4477_v35 = vld [vmem:[%s5754_s3 + $0xd0] sm:$0xff]   ;;  %v4481_v38 = vld [vmem:[%s5754_s3 + $0xd8] sm:$0xff]  }
 0x18e   : > { %1979 = vmatprep.subr.bf16.mxu0 %v3854_v39  ;;  %2020 = vmatprep.subr.bf16.mxu1 %v3856_v42  ;;  %v4482_v39 = vld [vmem:[%s5754_s3 + $0x18] sm:$0xff]   ;;  %v4485_v42 = vld [vmem:[%s5754_s3 + $0xe0] sm:$0xff]  }
 0x18f   : > { %2009 = vmatprep.mubr.bf16.mxu0 %v4673_v24  ;;  %2050 = vmatprep.mubr.bf16.mxu1 %v4673_v24  ;;  %v1042_v24 = vld [vmem:[%s5753_s2 + $0x278] sm:$0xff] }
 0x190   : > { %v3904_v1 = vcombine.high %v1034_v56, %v1042_v24  ;;  %v3903_v5 = vcombine.low %v1034_v56, %v1042_v24  ;;  %v4499_v56 = vld [vmem:[%s5754_s3 + $0xb8] sm:$0xff]   ;;  %v4500_v24 = vld [vmem:[%s5754_s3 + $0x140] sm:$0xff]  }
 0x191   : > { %1980 = vmatpush1.bf16.msra.mxu0 %v3853_v43  ;;  %2021 = vmatpush1.bf16.msra.mxu1 %v3855_v46  ;;  %v4486_v43 = vld [vmem:[%s5754_s3 + $0x20] sm:$0xff]   ;;  %v4489_v46 = vld [vmem:[%s5754_s3 + $0xe8] sm:$0xff]  }
 0x192   : > { %1981 = vmatprep.subr.bf16.mxu0 %v3870_v47  ;;  %2022 = vmatprep.subr.bf16.mxu1 %v3872_v50  ;;  %v4490_v47 = vld [vmem:[%s5754_s3 + $0x28] sm:$0xff]   ;;  %v4493_v50 = vld [vmem:[%s5754_s3 + $0xf0] sm:$0xff]  }
 0x195   : > { %1982 = vmatpush1.bf16.msra.mxu0 %v3869_v51  ;;  %2023 = vmatpush1.bf16.msra.mxu1 %v3871_v54  ;;  %v4494_v51 = vld [vmem:[%s5754_s3 + $0x30] sm:$0xff]   ;;  %v4497_v54 = vld [vmem:[%s5754_s3 + $0xf8] sm:$0xff]  }
 0x196   : > { %1983 = vmatprep.subr.bf16.mxu0 %v3886_v55  ;;  %2024 = vmatprep.subr.bf16.mxu1 %v3888_v57  ;;  %v4498_v55 = vld [vmem:[%s5754_s3 + $0x38] sm:$0xff]   ;;  %v4501_v57 = vld [vmem:[%s5754_s3 + $0x1c0] sm:$0xff]  }
 0x199   : > { %1984 = vmatpush1.bf16.msra.mxu0 %v3885_v58  ;;  %2025 = vmatpush1.bf16.msra.mxu1 %v3887_v61 }
 0x19a   : > { %1985 = vmatprep.subr.bf16.mxu0 %v3902_v62  ;;  %2026 = vmatprep.subr.bf16.mxu1 %v3904_v1 }
 0x19d   : > { %1986 = vmatpush1.bf16.msra.mxu0 %v3901_v2  ;;  %2027 = vmatpush1.bf16.msra.mxu1 %v3903_v5  ;;  %v4502_v2 = vld [vmem:[%s5754_s3 + $0x100] sm:$0xff]  }
 0x19e   : > { %1987 = vmatprep.subr.bf16.mxu0 %v3918_v6  ;;  %2028 = vmatprep.subr.bf16.mxu1 %v3920_v9  ;;  %v4503_v6 = vld [vmem:[%s5754_s3 + $0x180] sm:$0xff]   ;;  %v4505_v9 = vld [vmem:[%s5754_s3 + $0x1c8] sm:$0xff]  }
 0x1a1   : > { %1988 = vmatpush1.bf16.msra.mxu0 %v3917_v10  ;;  %2029 = vmatpush1.bf16.msra.mxu1 %v3919_v11  ;;  %v4506_v10 = vld [vmem:[%s5754_s3 + $0x108] sm:$0xff]  }
 0x1a2   : > { %1989 = vmatprep.subr.bf16.mxu0 %v3934_v12  ;;  %2030 = vmatprep.subr.bf16.mxu1 %v3936_v13  ;;  %v4507_v11 = vld [vmem:[%s5754_s3 + $0x188] sm:$0xff]   ;;  %v4508_v12 = vld [vmem:[%s5754_s3 + $0x150] sm:$0xff]  }
 0x1a3   : > { %v4509_v13 = vld [vmem:[%s5754_s3 + $0x1d0] sm:$0xff]  }
 0x1a5   : > { %1990 = vmatpush1.bf16.msra.mxu0 %v3933_v18  ;;  %2031 = vmatpush1.bf16.msra.mxu1 %v3935_v19  ;;  %v4514_v18 = vld [vmem:[%s5754_s3 + $0x118] sm:$0xff]  }
 0x1a6   : > { %1991 = vmatprep.subr.bf16.mxu0 %v3950_v20  ;;  %2032 = vmatprep.subr.bf16.mxu1 %v3952_v21  ;;  %v4515_v19 = vld [vmem:[%s5754_s3 + $0x198] sm:$0xff]   ;;  %v4516_v20 = vld [vmem:[%s5754_s3 + $0x160] sm:$0xff]  }
 0x1a7   : > { %v4517_v21 = vld [vmem:[%s5754_s3 + $0x1e0] sm:$0xff]  }
 0x1a9   : > { %1992 = vmatpush1.bf16.msra.mxu0 %v3949_v22  ;;  %2033 = vmatpush1.bf16.msra.mxu1 %v3951_v23  ;;  %v4518_v22 = vld [vmem:[%s5754_s3 + $0x120] sm:$0xff]  }
 0x1aa   : > { %4120 = vmatprep.subr.bf16.mxu0 %v4468_v25  ;;  %4142 = vmatprep.subr.bf16.mxu1 %v4469_v26  ;;  %v4519_v23 = vld [vmem:[%s5754_s3 + $0x1a0] sm:$0xff]   ;;  %v4520_v25 = vld [vmem:[%s5754_s3 + $0x168] sm:$0xff]  }
 0x1ab   : > { %v4521_v26 = vld [vmem:[%s5754_s3 + $0x1e8] sm:$0xff]  }
 0x1ac   : > { %2010 = vmatmul.mubr.bf16.vlgmr.msra.gmra.mrb[12].mxu0 %v4977_v28  ;;  %2051 = vmatmul.mubr.bf16.vlgmr.msra.gmra.mrb[12].mxu1 %v4977_v28  ;;  %v4479_v28 = vld [vmem:[%s5754_s3 + $0x90] sm:$0xff]  }
 0x1ad   : > { %4121 = vmatpush3.bf16.msra.mxu0 %v4470_v27  ;;  %4143 = vmatpush3.bf16.msra.mxu1 %v4471_v29  ;;  %v4522_v27 = vld [vmem:[%s5754_s3 + $0x128] sm:$0xff]  }
 0x1ae   : > { %4122 = vmatprep.subr.bf16.mxu0 %v4472_v30  ;;  %4144 = vmatprep.subr.bf16.mxu1 %v4473_v31  ;;  %v4523_v29 = vld [vmem:[%s5754_s3 + $0x1a8] sm:$0xff]   ;;  %v4524_v30 = vld [vmem:[%s5754_s3 + $0x170] sm:$0xff]  }
 0x1af   : > { %v4525_v31 = vld [vmem:[%s5754_s3 + $0x1f0] sm:$0xff]  }
 0x1b1   : > { %4123 = vmatpush3.bf16.msra.mxu0 %v4474_v32  ;;  %4145 = vmatpush3.bf16.msra.mxu1 %v4475_v33  ;;  %v4526_v32 = vld [vmem:[%s5754_s3 + $0x130] sm:$0xff]  }
 0x1b2   : > { %4124 = vmatprep.subr.bf16.mxu0 %v4476_v34  ;;  %4146 = vmatprep.subr.bf16.mxu1 %v4477_v35  ;;  %v4527_v33 = vld [vmem:[%s5754_s3 + $0x1b0] sm:$0xff]   ;;  %v4528_v34 = vld [vmem:[%s5754_s3 + $0x178] sm:$0xff]  }
 0x1b3   : > { %v4529_v35 = vld [vmem:[%s5754_s3 + $0x1f8] sm:$0xff]  }
 0x1b5   : > { %4125 = vmatpush3.bf16.msra.mxu0 %v4478_v36  ;;  %4147 = vmatpush3.bf16.msra.mxu1 %v4479_v28  ;;  %v4530_v36 = vld [vmem:[%s5754_s3 + $0x138] sm:$0xff]  }
 0x1b6   : > { %4126 = vmatprep.subr.bf16.mxu0 %v4480_v37  ;;  %4148 = vmatprep.subr.bf16.mxu1 %v4481_v38  ;;  %v4531_v28 = vld [vmem:[%s5754_s3 + $0x1b8] sm:$0xff]   ;;  %v4532_v37 = vld [vmem:[%s5754_s3 + $0x240] sm:$0xff]  }
 0x1b9   : > { %4127 = vmatpush3.bf16.msra.mxu0 %v4482_v39  ;;  %4149 = vmatpush3.bf16.msra.mxu1 %v4483_v40  ;;  %v4533_v39 = vld [vmem:[%s5754_s3 + $0x2c0] sm:$0xff]  }
 0x1ba   : > { %4128 = vmatprep.subr.bf16.mxu0 %v4484_v41  ;;  %4150 = vmatprep.subr.bf16.mxu1 %v4485_v42 }
 0x1bd   : > { %4129 = vmatpush3.bf16.msra.mxu0 %v4486_v43  ;;  %4151 = vmatpush3.bf16.msra.mxu1 %v4487_v44 }
 0x1be   : > { %4130 = vmatprep.subr.bf16.mxu0 %v4488_v45  ;;  %4152 = vmatprep.subr.bf16.mxu1 %v4489_v46 }
 0x1c1   : > { %4131 = vmatpush3.bf16.msra.mxu0 %v4490_v47  ;;  %4153 = vmatpush3.bf16.msra.mxu1 %v4491_v48  ;;  %v4534_v47 = vld [vmem:[%s5754_s3 + $0x200] sm:$0xff]  }
 0x1c2   : > { %4132 = vmatprep.subr.bf16.mxu0 %v4492_v49  ;;  %4154 = vmatprep.subr.bf16.mxu1 %v4493_v50 }
 0x1c5   : > { %4133 = vmatpush3.bf16.msra.mxu0 %v4494_v51  ;;  %4155 = vmatpush3.bf16.msra.mxu1 %v4495_v52  ;;  %v4535_v51 = vld [vmem:[%s5754_s3 + $0x280] sm:$0xff]   ;;  %v4536_v52 = vld [vmem:[%s5754_s3 + $0x248] sm:$0xff]  }
 0x1c6   : > { %4134 = vmatprep.subr.bf16.mxu0 %v4496_v53  ;;  %4156 = vmatprep.subr.bf16.mxu1 %v4497_v54  ;;  %v4537_v54 = vld [vmem:[%s5754_s3 + $0x2c8] sm:$0xff]  }
 0x1c9   : > { %4135 = vmatpush3.bf16.msra.mxu0 %v4498_v55  ;;  %4157 = vmatpush3.bf16.msra.mxu1 %v4499_v56  ;;  %v4538_v55 = vld [vmem:[%s5754_s3 + $0x208] sm:$0xff]  }
 0x1ca   : > { %4164 = vmatprep.subr.bf16.mxu0 %v4500_v24  ;;  %4186 = vmatprep.subr.bf16.mxu1 %v4501_v57  ;;  %v4539_v56 = vld [vmem:[%s5754_s3 + $0x288] sm:$0xff]   ;;  %v4540_v24 = vld [vmem:[%s5754_s3 + $0x250] sm:$0xff]  }
 0x1cb   : > { %v4541_v57 = vld [vmem:[%s5754_s3 + $0x2d0] sm:$0xff]  }
 0x21f   : > { %v1765_v58 = vpop.f32.mrb[0].mxu0  ;;  %v1806_v60 = vpop.f32.mrb[0].mxu1 }
 0x220   : > { %v2059_v59 = vpack.c.bf16 %v1765_v58, %v1765_v58  ;;  %v1767_v61 = vpop.f32.mrb[1].mxu0  ;;  %v2061_v62 = vpack.c.bf16 %v1806_v60, %v1806_v60  ;;  %v1808_v0 = vpop.f32.mrb[1].mxu1  ;;  %v4542_v58 = vld [vmem:[%s5754_s3 + $0x210] sm:$0xff]   ;;  %v4544_v60 = vld [vmem:[%s5754_s3 + $0x258] sm:$0xff]  }
 0x221   : > { %v2060_v63 = vpack.c.bf16 %v1767_v61, %v1767_v61  ;;  %v1769_v1 = vpop.f32.mrb[2].mxu0  ;;  %v2062_v3 = vpack.c.bf16 %v1808_v0, %v1808_v0  ;;  %v1810_v4 = vpop.f32.mrb[2].mxu1  ;;  %v4545_v61 = vld [vmem:[%s5754_s3 + $0x2d8] sm:$0xff]   ;;  %v4548_v0 = vld [vmem:[%s5754_s3 + $0x260] sm:$0xff]  }
 0x222   : > { %v1770_v5 = vpop.f32.mrb[3].mxu0  ;;  %v1811_v8 = vpop.f32.mrb[3].mxu1  ;;  %v4549_v1 = vld [vmem:[%s5754_s3 + $0x2e0] sm:$0xff]   ;;  %v4552_v4 = vld [vmem:[%s5754_s3 + $0x268] sm:$0xff]  }
 0x223   : > { %3131 = vmatprep.mubr.bf16.mxu0 %v2060_v63  ;;  %3171 = vmatprep.mubr.bf16.mxu1 %v2062_v3  ;;  %v4547_v63 = vld [vmem:[%s5754_s3 + $0x298] sm:$0xff]   ;;  %v4551_v3 = vld [vmem:[%s5754_s3 + $0x2a0] sm:$0xff]   ;;  %v4553_v5 = vld [vmem:[%s5754_s3 + $0x2e8] sm:$0xff]  }
 0x224   : > { %3132 = vmatmul.mubr.bf16.vlgmr.msra.gmra.mrb[16].mxu0 %v2059_v59  ;;  %3172 = vmatmul.mubr.bf16.vlgmr.msra.gmra.mrb[16].mxu1 %v2061_v62  ;;  %v4543_v59 = vld [vmem:[%s5754_s3 + $0x290] sm:$0xff]   ;;  %v4546_v62 = vld [vmem:[%s5754_s3 + $0x218] sm:$0xff]  }
 0x225   : > { %4165 = vmatpush3.bf16.msra.mxu0 %v4502_v2  ;;  %4187 = vmatpush3.bf16.msra.mxu1 %v4503_v6  ;;  %v4550_v2 = vld [vmem:[%s5754_s3 + $0x220] sm:$0xff]   ;;  %v4554_v6 = vld [vmem:[%s5754_s3 + $0x228] sm:$0xff]   ;;  %v4556_v8 = vld [vmem:[%s5754_s3 + $0x270] sm:$0xff]  }
 0x226   : > { %4166 = vmatprep.subr.bf16.mxu0 %v4504_v7  ;;  %4188 = vmatprep.subr.bf16.mxu1 %v4505_v9  ;;  %v4555_v7 = vld [vmem:[%s5754_s3 + $0x2a8] sm:$0xff]   ;;  %v4557_v9 = vld [vmem:[%s5754_s3 + $0x2f0] sm:$0xff]  }
 0x229   : > { %4167 = vmatpush3.bf16.msra.mxu0 %v4506_v10  ;;  %4189 = vmatpush3.bf16.msra.mxu1 %v4507_v11  ;;  %v4558_v10 = vld [vmem:[%s5754_s3 + $0x230] sm:$0xff]  }
 0x22a   : > { %4168 = vmatprep.subr.bf16.mxu0 %v4508_v12  ;;  %4190 = vmatprep.subr.bf16.mxu1 %v4509_v13  ;;  %v4559_v11 = vld [vmem:[%s5754_s3 + $0x2b0] sm:$0xff]   ;;  %v4560_v12 = vld [vmem:[%s5754_s3 + $0x278] sm:$0xff]  }
 0x22b   : > { %v4561_v13 = vld [vmem:[%s5754_s3 + $0x2f8] sm:$0xff]  }
 0x22d   : > { %4169 = vmatpush3.bf16.msra.mxu0 %v4510_v14  ;;  %4191 = vmatpush3.bf16.msra.mxu1 %v4511_v15  ;;  %v4562_v14 = vld [vmem:[%s5754_s3 + $0x238] sm:$0xff]  }
 0x22e   : > { %4170 = vmatprep.subr.bf16.mxu0 %v4512_v16  ;;  %4192 = vmatprep.subr.bf16.mxu1 %v4513_v17  ;;  %v4563_v15 = vld [vmem:[%s5754_s3 + $0x2b8] sm:$0xff]   ;;  %v4564_v16 = vld [vmem:[%s5754_s3 + $0x340] sm:$0xff]  }
 0x231   : > { %4171 = vmatpush3.bf16.msra.mxu0 %v4514_v18  ;;  %4193 = vmatpush3.bf16.msra.mxu1 %v4515_v19  ;;  %v4565_v18 = vld [vmem:[%s5754_s3 + $0x3c0] sm:$0xff]  }
 0x232   : > { %4172 = vmatprep.subr.bf16.mxu0 %v4516_v20  ;;  %4194 = vmatprep.subr.bf16.mxu1 %v4517_v21 }
 0x235   : > { %4173 = vmatpush3.bf16.msra.mxu0 %v4518_v22  ;;  %4195 = vmatpush3.bf16.msra.mxu1 %v4519_v23 }
 0x236   : > { %4174 = vmatprep.subr.bf16.mxu0 %v4520_v25  ;;  %4196 = vmatprep.subr.bf16.mxu1 %v4521_v26 }
 0x239   : > { %4175 = vmatpush3.bf16.msra.mxu0 %v4522_v27  ;;  %4197 = vmatpush3.bf16.msra.mxu1 %v4523_v29  ;;  %v4566_v27 = vld [vmem:[%s5754_s3 + $0x300] sm:$0xff]  }
 0x23a   : > { %4176 = vmatprep.subr.bf16.mxu0 %v4524_v30  ;;  %4198 = vmatprep.subr.bf16.mxu1 %v4525_v31 }
 0x23d   : > { %4177 = vmatpush3.bf16.msra.mxu0 %v4526_v32  ;;  %4199 = vmatpush3.bf16.msra.mxu1 %v4527_v33  ;;  %v4567_v32 = vld [vmem:[%s5754_s3 + $0x380] sm:$0xff]   ;;  %v4568_v33 = vld [vmem:[%s5754_s3 + $0x348] sm:$0xff]  }
 0x23e   : > { %4178 = vmatprep.subr.bf16.mxu0 %v4528_v34  ;;  %4200 = vmatprep.subr.bf16.mxu1 %v4529_v35  ;;  %v4569_v35 = vld [vmem:[%s5754_s3 + $0x3c8] sm:$0xff]  }
 0x23f   : > { %v1847_v38 = vpop.f32.mrb[4].mxu0  ;;  %v1888_v41 = vpop.f32.mrb[4].mxu1 }
 0x240   : > { %v2063_v40 = vpack.c.bf16 %v1847_v38, %v1847_v38  ;;  %v1849_v42 = vpop.f32.mrb[5].mxu0  ;;  %v2065_v43 = vpack.c.bf16 %v1888_v41, %v1888_v41  ;;  %v1890_v45 = vpop.f32.mrb[5].mxu1  ;;  %v4573_v38 = vld [vmem:[%s5754_s3 + $0x3d0] sm:$0xff]   ;;  %v4576_v41 = vld [vmem:[%s5754_s3 + $0x358] sm:$0xff]  }
 0x241   : > { %v2064_v44 = vpack.c.bf16 %v1849_v42, %v1849_v42  ;;  %v1851_v46 = vpop.f32.mrb[6].mxu0  ;;  %4179 = vmatpush3.bf16.msra.mxu0 %v4530_v36  ;;  %v2066_v48 = vpack.c.bf16 %v1890_v45, %v1890_v45  ;;  %v1892_v49 = vpop.f32.mrb[6].mxu1  ;;  %4201 = vmatpush3.bf16.msra.mxu1 %v4531_v28  ;;  %v4570_v36 = vld [vmem:[%s5754_s3 + $0x308] sm:$0xff]   ;;  %v4577_v42 = vld [vmem:[%s5754_s3 + $0x3d8] sm:$0xff]   ;;  %v4580_v45 = vld [vmem:[%s5754_s3 + $0x360] sm:$0xff]  }
 0x242   : > { %v1852_v50 = vpop.f32.mrb[7].mxu0  ;;  %4208 = vmatprep.subr.bf16.mxu0 %v4532_v37  ;;  %v1893_v53 = vpop.f32.mrb[7].mxu1  ;;  %4230 = vmatprep.subr.bf16.mxu1 %v4533_v39  ;;  %v4571_v28 = vld [vmem:[%s5754_s3 + $0x388] sm:$0xff]   ;;  %v4572_v37 = vld [vmem:[%s5754_s3 + $0x350] sm:$0xff]   ;;  %v4581_v46 = vld [vmem:[%s5754_s3 + $0x3e0] sm:$0xff]  }
 0x243   : > { %3211 = vmatprep.mubr.bf16.mxu0 %v2064_v44  ;;  %3251 = vmatprep.mubr.bf16.mxu1 %v2066_v48  ;;  %v4574_v39 = vld [vmem:[%s5754_s3 + $0x310] sm:$0xff]   ;;  %v4579_v44 = vld [vmem:[%s5754_s3 + $0x398] sm:$0xff]   ;;  %v4583_v48 = vld [vmem:[%s5754_s3 + $0x3a0] sm:$0xff]  }
 0x244   : > { %3212 = vmatmul.mubr.bf16.vlgmr.msra.gmra.mrb[20].mxu0 %v2063_v40  ;;  %3252 = vmatmul.mubr.bf16.vlgmr.msra.gmra.mrb[20].mxu1 %v2065_v43  ;;  %v4575_v40 = vld [vmem:[%s5754_s3 + $0x390] sm:$0xff]   ;;  %v4578_v43 = vld [vmem:[%s5754_s3 + $0x318] sm:$0xff]   ;;  %v4584_v49 = vld [vmem:[%s5754_s3 + $0x368] sm:$0xff]  }
 0x245   : > { %4209 = vmatpush3.bf16.msra.mxu0 %v4534_v47  ;;  %4231 = vmatpush3.bf16.msra.mxu1 %v4535_v51  ;;  %v4582_v47 = vld [vmem:[%s5754_s3 + $0x320] sm:$0xff]   ;;  %v4585_v50 = vld [vmem:[%s5754_s3 + $0x3e8] sm:$0xff]   ;;  %v4588_v53 = vld [vmem:[%s5754_s3 + $0x370] sm:$0xff]  }
 0x246   : > { %4210 = vmatprep.subr.bf16.mxu0 %v4536_v52  ;;  %4232 = vmatprep.subr.bf16.mxu1 %v4537_v54  ;;  %v4586_v51 = vld [vmem:[%s5754_s3 + $0x328] sm:$0xff]   ;;  %v4589_v54 = vld [vmem:[%s5754_s3 + $0x3f0] sm:$0xff]  }
 0x247   : > { %v4587_v52 = vld [vmem:[%s5754_s3 + $0x3a8] sm:$0xff]  }
 0x249   : > { %4211 = vmatpush3.bf16.msra.mxu0 %v4538_v55  ;;  %4233 = vmatpush3.bf16.msra.mxu1 %v4539_v56  ;;  %v4590_v55 = vld [vmem:[%s5754_s3 + $0x330] sm:$0xff]  }
 0x24a   : > { %4212 = vmatprep.subr.bf16.mxu0 %v4540_v24  ;;  %4234 = vmatprep.subr.bf16.mxu1 %v4541_v57  ;;  %v4591_v56 = vld [vmem:[%s5754_s3 + $0x3b0] sm:$0xff]   ;;  %v4592_v24 = vld [vmem:[%s5754_s3 + $0x378] sm:$0xff]  }
 0x24b   : > { %v4593_v57 = vld [vmem:[%s5754_s3 + $0x3f8] sm:$0xff]  }
 0x24d   : > { %4213 = vmatpush3.bf16.msra.mxu0 %v4542_v58  ;;  %4235 = vmatpush3.bf16.msra.mxu1 %v4543_v59  ;;  %v4594_v58 = vld [vmem:[%s5754_s3 + $0x338] sm:$0xff]  }
 0x24e   : > { %4214 = vmatprep.subr.bf16.mxu0 %v4544_v60  ;;  %4236 = vmatprep.subr.bf16.mxu1 %v4545_v61  ;;  %v4595_v59 = vld [vmem:[%s5754_s3 + $0x3b8] sm:$0xff]  }
 0x251   : > { %4215 = vmatpush3.bf16.msra.mxu0 %v4546_v62  ;;  %4237 = vmatpush3.bf16.msra.mxu1 %v4547_v63 }
 0x252   : > { %4216 = vmatprep.subr.bf16.mxu0 %v4548_v0  ;;  %4238 = vmatprep.subr.bf16.mxu1 %v4549_v1 }
 0x255   : > { %4217 = vmatpush3.bf16.msra.mxu0 %v4550_v2  ;;  %4239 = vmatpush3.bf16.msra.mxu1 %v4551_v3 }
 0x256   : > { %4218 = vmatprep.subr.bf16.mxu0 %v4552_v4  ;;  %4240 = vmatprep.subr.bf16.mxu1 %v4553_v5 }
 0x259   : > { %4219 = vmatpush3.bf16.msra.mxu0 %v4554_v6  ;;  %4241 = vmatpush3.bf16.msra.mxu1 %v4555_v7 }
 0x25a   : > { %4220 = vmatprep.subr.bf16.mxu0 %v4556_v8  ;;  %4242 = vmatprep.subr.bf16.mxu1 %v4557_v9 }
 0x25d   : > { %4221 = vmatpush3.bf16.msra.mxu0 %v4558_v10  ;;  %4243 = vmatpush3.bf16.msra.mxu1 %v4559_v11  ;;  %v4596_v11 = vld [vmem:[%s5757_s6] sm:$0xff]  }
 0x25e   : > { %4222 = vmatprep.subr.bf16.mxu0 %v4560_v12  ;;  %4244 = vmatprep.subr.bf16.mxu1 %v4561_v13 }
 0x25f   : > { %v1929_v17 = vpop.f32.mrb[8].mxu0  ;;  %v1970_v20 = vpop.f32.mrb[8].mxu1 }
 0x260   : > { %v2067_v19 = vpack.c.bf16 %v1929_v17, %v1929_v17  ;;  %v1931_v21 = vpop.f32.mrb[9].mxu0  ;;  %v2069_v22 = vpack.c.bf16 %v1970_v20, %v1970_v20  ;;  %v1972_v25 = vpop.f32.mrb[9].mxu1 }
 0x261   : > { %v2068_v23 = vpack.c.bf16 %v1931_v21, %v1931_v21  ;;  %v1933_v26 = vpop.f32.mrb[10].mxu0  ;;  %4223 = vmatpush3.bf16.msra.mxu0 %v4562_v14  ;;  %v2070_v29 = vpack.c.bf16 %v1972_v25, %v1972_v25  ;;  %v1974_v30 = vpop.f32.mrb[10].mxu1  ;;  %4245 = vmatpush3.bf16.msra.mxu1 %v4563_v15  ;;  %v4674_v15 = vmov 0.0   ;;  %v4597_v21 = vld [vmem:[%s5757_s6 + $0x8] sm:$0xff]   ;;  %v4600_v25 = vld [vmem:[%s5757_s6 + $0x20] sm:$0xff]  }
 0x262   : > { %v1934_v31 = vpop.f32.mrb[11].mxu0  ;;  %4252 = vmatprep.subr.bf16.mxu0 %v4564_v16  ;;  %v1975_v34 = vpop.f32.mrb[11].mxu1  ;;  %4274 = vmatprep.subr.bf16.mxu1 %v4565_v18  ;;  %v4601_v26 = vld [vmem:[%s5757_s6 + $0x28] sm:$0xff]  }
 0x263   : > { %3291 = vmatprep.mubr.bf16.mxu0 %v2068_v23  ;;  %3331 = vmatprep.mubr.bf16.mxu1 %v2070_v29  ;;  %v4599_v23 = vld [vmem:[%s5757_s6 + $0x18] sm:$0xff]  }
 0x264   : > { %3292 = vmatmul.mubr.bf16.vlgmr.msra.gmra.mrb[24].mxu0 %v2067_v19  ;;  %3332 = vmatmul.mubr.bf16.vlgmr.msra.gmra.mrb[24].mxu1 %v2069_v22  ;;  %v4598_v22 = vld [vmem:[%s5757_s6 + $0x10] sm:$0xff]   ;;  %v4603_v29 = vld [vmem:[%s5757_s6 + $0x38] sm:$0xff]  }
 0x265   : > { %4253 = vmatpush3.bf16.msra.mxu0 %v4566_v27  ;;  %4275 = vmatpush3.bf16.msra.mxu1 %v4567_v32  ;;  %v4602_v27 = vld [vmem:[%s5757_s6 + $0x30] sm:$0xff]  }
 0x266   : > { %4254 = vmatprep.subr.bf16.mxu0 %v4568_v33  ;;  %4276 = vmatprep.subr.bf16.mxu1 %v4569_v35 }
 0x269   : > { %4255 = vmatpush3.bf16.msra.mxu0 %v4570_v36  ;;  %4277 = vmatpush3.bf16.msra.mxu1 %v4571_v28 }
 0x26a   : > { %4256 = vmatprep.subr.bf16.mxu0 %v4572_v37  ;;  %4278 = vmatprep.subr.bf16.mxu1 %v4573_v38 }
 0x26d   : > { %4257 = vmatpush3.bf16.msra.mxu0 %v4574_v39  ;;  %4279 = vmatpush3.bf16.msra.mxu1 %v4575_v40 }
 0x26e   : > { %4258 = vmatprep.subr.bf16.mxu0 %v4576_v41  ;;  %4280 = vmatprep.subr.bf16.mxu1 %v4577_v42 }
 0x271   : > { %4259 = vmatpush3.bf16.msra.mxu0 %v4578_v43  ;;  %4281 = vmatpush3.bf16.msra.mxu1 %v4579_v44 }
 0x272   : > { %4260 = vmatprep.subr.bf16.mxu0 %v4580_v45  ;;  %4282 = vmatprep.subr.bf16.mxu1 %v4581_v46 }
 0x275   : > { %4261 = vmatpush3.bf16.msra.mxu0 %v4582_v47  ;;  %4283 = vmatpush3.bf16.msra.mxu1 %v4583_v48 }
 0x276   : > { %4262 = vmatprep.subr.bf16.mxu0 %v4584_v49  ;;  %4284 = vmatprep.subr.bf16.mxu1 %v4585_v50 }
 0x279   : > { %4263 = vmatpush3.bf16.msra.mxu0 %v4586_v51  ;;  %4285 = vmatpush3.bf16.msra.mxu1 %v4587_v52 }
 0x27a   : > { %4264 = vmatprep.subr.bf16.mxu0 %v4588_v53  ;;  %4286 = vmatprep.subr.bf16.mxu1 %v4589_v54 }
 0x27d   : > { %4265 = vmatpush3.bf16.msra.mxu0 %v4590_v55  ;;  %4287 = vmatpush3.bf16.msra.mxu1 %v4591_v56 }
 0x27e   : > { %4266 = vmatprep.subr.bf16.mxu0 %v4592_v24  ;;  %4288 = vmatprep.subr.bf16.mxu1 %v4593_v57 }
 0x27f   : > { %v2011_v60 = vpop.f32.mrb[12].mxu0  ;;  %v2052_v61 = vpop.f32.mrb[12].mxu1 }
 0x280   : > { %v2013_v62 = vpop.f32.mrb[13].mxu0  ;;  %v2073_v63 = vpack.c.bf16 %v2052_v61, %v2052_v61  ;;  %v2054_v1 = vpop.f32.mrb[13].mxu1  ;;  %v2071_v3 = vpack.c.bf16 %v2011_v60, %v2011_v60 }
 0x281   : > { %v2072_v0 = vpack.c.bf16 %v2013_v62, %v2013_v62  ;;  %v2015_v2 = vpop.f32.mrb[14].mxu0  ;;  %4267 = vmatpush3.bf16.msra.mxu0 %v4594_v58  ;;  %v2074_v4 = vpack.c.bf16 %v2054_v1, %v2054_v1  ;;  %v2056_v5 = vpop.f32.mrb[14].mxu1  ;;  %4289 = vmatpush3.bf16.msra.mxu1 %v4595_v59 }
 0x282   : > { %v2016_v6 = vpop.f32.mrb[15].mxu0  ;;  %v2057_v7 = vpop.f32.mrb[15].mxu1  ;;  %4348 = vmatprep.subr.bf16.mxu0 %v4674_v15  ;;  %4368 = vmatprep.subr.bf16.mxu1 %v4674_v15 }
 0x283   : > { %3371 = vmatprep.mubr.bf16.mxu0 %v2072_v0  ;;  %3411 = vmatprep.mubr.bf16.mxu1 %v2074_v4 }
 0x284   : > { %3372 = vmatmul.mubr.bf16.vlgmr.msra.gmra.mrb[28].mxu0 %v2071_v3  ;;  %3412 = vmatmul.mubr.bf16.vlgmr.msra.gmra.mrb[28].mxu1 %v2073_v63 }
 0x285   : > { %4349 = vmatpush3.bf16.msra.mxu0 %v4596_v11  ;;  %4364 = vmatprep.mubr.msk.bf16.mxu0 %vm4675_vm3, %v4674_v15 }
 0x286   : > { %4350 = vmatprep.subr.bf16.mxu0 %v4674_v15  ;;  %4384 = vmatprep.mubr.msk.bf16.mxu1 %vm4675_vm3, %v4674_v15 }
 0x289   : > { %4351 = vmatpush3.bf16.msra.mxu0 %v4597_v21  ;;  %v4081_v21 = vld [vmem:[%s5755_s4] ss:$0 sm:$0xff] }
 0x28a   : > { %4352 = vmatprep.subr.bf16.mxu0 %v4674_v15 }
 0x28d   : > { %4353 = vmatpush3.bf16.msra.mxu0 %v4598_v22 }
 0x28e   : > { %4354 = vmatprep.subr.bf16.mxu0 %v4674_v15 }
 0x291   : > { %4355 = vmatpush3.bf16.msra.mxu0 %v4599_v23  ;;  %v4082_v23 = vld [vmem:[%s5756_s5] ss:$0 sm:$0xff] }
 0x292   : > { %4356 = vmatprep.subr.bf16.mxu0 %v4674_v15 }
 0x295   : > { %4357 = vmatpush3.bf16.msra.mxu0 %v4600_v25 }
 0x296   : > { %4358 = vmatprep.subr.bf16.mxu0 %v4674_v15 }
 0x299   : > { %4359 = vmatpush3.bf16.msra.mxu0 %v4601_v26 }
 0x29a   : > { %4360 = vmatprep.subr.bf16.mxu0 %v4674_v15 }
 0x29d   : > { %4361 = vmatpush3.bf16.msra.mxu0 %v4602_v27 }
 0x29e   : > { %4362 = vmatprep.subr.bf16.mxu0 %v4674_v15 }
 0x2a1   : > { %4363 = vmatpush3.bf16.msra.mxu0 %v4603_v29 }
 0x2f7   : > { %v4136_v8 = vpop.f32.mrb[16].mxu0  ;;  %v4158_v9 = vpop.f32.mrb[16].mxu1 }
 0x2f8   : > { %v4137_v10 = vpop.f32.mrb[17].mxu0  ;;  %v4159_v13 = vpop.f32.mrb[17].mxu1 }
 0x2f9   : > { %v4138_v12 = vadd.f32 %v4137_v10, %v4136_v8  ;;  %v4139_v14 = vpop.f32.mrb[18].mxu0  ;;  %v4160_v16 = vadd.f32 %v4159_v13, %v4158_v9  ;;  %v4161_v17 = vpop.f32.mrb[18].mxu1 }
 0x2fa   : > { %v4140_v18 = vpop.f32.mrb[19].mxu0  ;;  %v4162_v19 = vpop.f32.mrb[19].mxu1 }
 0x2fb   : > { %v3174_v20 = vadd.f32 %v4160_v16, %v4138_v12 }
 0x317   : > { %v4180_v30 = vpop.f32.mrb[20].mxu0  ;;  %v4202_v31 = vpop.f32.mrb[20].mxu1 }
 0x318   : > { %v4181_v32 = vpop.f32.mrb[21].mxu0  ;;  %v4203_v34 = vpop.f32.mrb[21].mxu1 }
 0x319   : > { %v4182_v33 = vadd.f32 %v4181_v32, %v4180_v30  ;;  %v4183_v35 = vpop.f32.mrb[22].mxu0  ;;  %v4204_v36 = vadd.f32 %v4203_v34, %v4202_v31  ;;  %v4205_v28 = vpop.f32.mrb[22].mxu1  ;;  %v4604_v30 = vld [vmem:[%s5760_s9] sm:$0xff]   ;;  %v4605_v31 = vld [vmem:[%s5760_s9 + $0x8] sm:$0xff]   ;;  %v4606_v32 = vld [vmem:[%s5760_s9 + $0x10] sm:$0xff]  }
 0x31a   : > { %v4184_v37 = vpop.f32.mrb[23].mxu0  ;;  %v4206_v39 = vpop.f32.mrb[23].mxu1  ;;  %4369 = vmatpush3.bf16.msra.mxu1 %v4604_v30  ;;  %v4608_v34 = vld [vmem:[%s5760_s9 + $0x20] sm:$0xff]   ;;  %v4609_v35 = vld [vmem:[%s5760_s9 + $0x28] sm:$0xff]   ;;  %v4611_v28 = vld [vmem:[%s5760_s9 + $0x38] sm:$0xff]  }
 0x31b   : > { %v3214_v38 = vadd.f32 %v4182_v33, %v3174_v20  ;;  %4370 = vmatprep.subr.bf16.mxu1 %v4674_v15  ;;  %v4607_v33 = vld [vmem:[%s5760_s9 + $0x18] sm:$0xff]  }
 0x31d   : > { %v3254_v40 = vadd.f32 %v4204_v36, %v3214_v38  ;;  %v4610_v36 = vld [vmem:[%s5760_s9 + $0x30] sm:$0xff]  }
 0x31e   : > { %4371 = vmatpush3.bf16.msra.mxu1 %v4605_v31 }
 0x31f   : > { %4372 = vmatprep.subr.bf16.mxu1 %v4674_v15 }
 0x322   : > { %4373 = vmatpush3.bf16.msra.mxu1 %v4606_v32 }
 0x323   : > { %4374 = vmatprep.subr.bf16.mxu1 %v4674_v15 }
 0x326   : > { %4375 = vmatpush3.bf16.msra.mxu1 %v4607_v33 }
 0x327   : > { %4376 = vmatprep.subr.bf16.mxu1 %v4674_v15 }
 0x32a   : > { %4377 = vmatpush3.bf16.msra.mxu1 %v4608_v34 }
 0x32b   : > { %4378 = vmatprep.subr.bf16.mxu1 %v4674_v15 }
 0x32e   : > { %4379 = vmatpush3.bf16.msra.mxu1 %v4609_v35 }
 0x32f   : > { %4380 = vmatprep.subr.bf16.mxu1 %v4674_v15 }
 0x332   : > { %4381 = vmatpush3.bf16.msra.mxu1 %v4610_v36 }
 0x333   : > { %4382 = vmatprep.subr.bf16.mxu1 %v4674_v15 }
 0x336   : > { %4383 = vmatpush3.bf16.msra.mxu1 %v4611_v28 }
 0x337   : > { %v4224_v41 = vpop.f32.mrb[24].mxu0  ;;  %v4246_v42 = vpop.f32.mrb[24].mxu1 }
 0x338   : > { %v4225_v43 = vpop.f32.mrb[25].mxu0  ;;  %v4247_v45 = vpop.f32.mrb[25].mxu1 }
 0x339   : > { %v4226_v44 = vadd.f32 %v4225_v43, %v4224_v41  ;;  %v4227_v46 = vpop.f32.mrb[26].mxu0  ;;  %v4248_v47 = vadd.f32 %v4247_v45, %v4246_v42  ;;  %v4249_v48 = vpop.f32.mrb[26].mxu1 }
 0x33a   : > { %v4228_v49 = vpop.f32.mrb[27].mxu0  ;;  %v4250_v51 = vpop.f32.mrb[27].mxu1 }
 0x33b   : > { %v3294_v50 = vadd.f32 %v4226_v44, %v3254_v40 }
 0x33d   : > { %v3334_v52 = vadd.f32 %v4248_v47, %v3294_v50 }
 0x357   : > { %v4268_v53 = vpop.f32.mrb[28].mxu0  ;;  %v4290_v54 = vpop.f32.mrb[28].mxu1 }
 0x358   : > { %v4269_v55 = vpop.f32.mrb[29].mxu0  ;;  %v4291_v24 = vpop.f32.mrb[29].mxu1 }
 0x359   : > { %v4270_v56 = vadd.f32 %v4269_v55, %v4268_v53  ;;  %v4271_v57 = vpop.f32.mrb[30].mxu0  ;;  %v4292_v58 = vadd.f32 %v4291_v24, %v4290_v54  ;;  %v4293_v59 = vpop.f32.mrb[30].mxu1 }
 0x35a   : > { %v4272_v60 = vpop.f32.mrb[31].mxu0  ;;  %v4294_v62 = vpop.f32.mrb[31].mxu1  ;;  %v4091_v59 = vld [vmem:[%s5758_s7] ss:$0 sm:$0xff] }
 0x35b   : > { %v3374_v61 = vadd.f32 %v4270_v56, %v3334_v52 }
 0x35d   : > { %v3414_v63 = vadd.f32 %v4292_v58, %v3374_v61  ;;  %v4092_v61 = vld [vmem:[%s5759_s8] ss:$0 sm:$0xff] }
 0x35f   : > { %v3421_v0 = vsel %vm709_vm0, %v3414_v63, 0.0 }
 0x360   : > { %v3422_v1 = vrot.slane %v3421_v0, 4 }
 0x362   : > { %v3423_v2 = vadd.f32 %v3422_v1, %v3421_v0 }
 0x364   : > { %v3424_v3 = vrot.slane %v3423_v2, 2 }
 0x366   : > { %v3425_v4 = vadd.f32 %v3424_v3, %v3423_v2 }
 0x368   : > { %v3426_v5 = vrot.slane %v3425_v4, 1 }
 0x36a   : > { %v3427_v6 = vadd.f32 %v3426_v5, %v3425_v4 }
 0x36c   : > { %v3429_v7 = vmul.f32 0.5, %v3427_v6 }
 0x36e   : > { %v3430_v8 = vsub.f32 %v3414_v63, %v3429_v7 }
 0x370   : > { %v3431_v9 = vmul.f32 %v3430_v8, %v3430_v8 }
 0x372   : > { %v3432_v10 = vsel %vm709_vm0, %v3431_v9, 0.0 }
 0x373   : > { %v3433_v11 = vrot.slane %v3432_v10, 4 }
 0x375   : > { %v3434_v12 = vadd.f32 %v3433_v11, %v3432_v10 }
 0x377   : > { %v3435_v13 = vrot.slane %v3434_v12, 2 }
 0x379   : > { %v3436_v14 = vadd.f32 %v3435_v13, %v3434_v12 }
 0x37b   : > { %v3437_v16 = vrot.slane %v3436_v14, 1 }
 0x37d   : > { %v3438_v17 = vadd.f32 %v3437_v16, %v3436_v14 }
 0x37f   : > { %v3439_v18 = vmul.f32 0.5, %v3438_v17 }
 0x381   : > { %v3440_v19 = vadd.f32 1e-05, %v3439_v18 }
 0x383   : > { %4612 = vrsqrt.f32 %v3440_v19 }
 0x38d   : > { %v4613_v20 = vpop.eup %4612 }
 0x38e   : > { %v3442_v22 = vmul.f32 %v4613_v20, %v3430_v8 }
 0x390   : > { %v3449_v25 = vmul.f32 %v4081_v21, %v3442_v22 }
 0x392   : > { %v3456_v26 = vadd.f32 %v4082_v23, %v3449_v25 }
 0x394   : > { %v3457_v27 = vmax.f32 %v3456_v26, 0.0 }
 0x396   : > { %v3458_v29 = vpack.c.bf16 %v3457_v27, %v3457_v27 }
 0x398   : > { %4365 = vmatmul.mubr.bf16.vlgmr.msra.gmra.mrb[32].mxu0 %v3458_v29 }
 0x46b   : > { %v3557_v37 = vpop.f32.mrb[32].mxu0 }
 0x46c   : > { %v3565_v38 = vsel %vm709_vm0, %v3557_v37, 0.0  ;;  %v4366_v39 = vpop.f32.mrb[33].mxu0 }
 0x46d   : > { %v3566_v40 = vrot.slane %v3565_v38, 4  ;;  %v3560_v41 = vpop.f32.mrb[34].mxu0 }
 0x46e   : > { %v4367_v42 = vpop.f32.mrb[35].mxu0 }
 0x46f   : > { %v3567_v43 = vadd.f32 %v3566_v40, %v3565_v38 }
 0x471   : > { %v3568_v44 = vrot.slane %v3567_v43, 2 }
 0x473   : > { %v3569_v45 = vadd.f32 %v3568_v44, %v3567_v43 }
 0x475   : > { %v3570_v46 = vrot.slane %v3569_v45, 1 }
 0x477   : > { %v3571_v47 = vadd.f32 %v3570_v46, %v3569_v45 }
 0x479   : > { %v3572_v48 = vmul.f32 0.5, %v3571_v47 }
 0x47b   : > { %v3573_v49 = vsub.f32 %v3557_v37, %v3572_v48 }
 0x47d   : > { %v3574_v50 = vmul.f32 %v3573_v49, %v3573_v49 }
 0x47f   : > { %v3575_v51 = vsel %vm709_vm0, %v3574_v50, 0.0 }
 0x480   : > { %v3576_v52 = vrot.slane %v3575_v51, 4 }
 0x482   : > { %v3577_v15 = vadd.f32 %v3576_v52, %v3575_v51 }
 0x484   : > { %v3578_v53 = vrot.slane %v3577_v15, 2 }
 0x486   : > { %v3579_v54 = vadd.f32 %v3578_v53, %v3577_v15 }
 0x488   : > { %v3580_v55 = vrot.slane %v3579_v54, 1 }
 0x48a   : > { %v3581_v56 = vadd.f32 %v3580_v55, %v3579_v54 }
 0x48c   : > { %v3582_v24 = vmul.f32 0.5, %v3581_v56 }
 0x48e   : > { %v3583_v57 = vadd.f32 1e-05, %v3582_v24 }
 0x490   : > { %4614 = vrsqrt.f32 %v3583_v57 }
 0x49a   : > { %v4615_v58 = vpop.eup %4614 }
 0x49b   : > { %v3585_v60 = vmul.f32 %v4615_v58, %v3573_v49 }
 0x49d   : > { %v3592_v62 = vmul.f32 %v4091_v59, %v3585_v60 }
 0x49f   : > { %v3599_v63 = vadd.f32 %v4092_v61, %v3592_v62 }
 0x4a1   : > { %v3600_v0 = vmax.f32 %v3599_v63, 0.0 }
 0x4a3   : > { %v3601_v1 = vpack.c.bf16 %v3600_v0, %v3600_v0 }
 0x4a5   : > { %4385 = vmatmul.mubr.bf16.vlgmr.msra.gmra.mrb[32].mxu1 %v3601_v1 }
 0x578   : > { %v3700_v2 = vpop.f32.mrb[32].mxu1 }
 0x579   : > { %3706 = vst [vmem:[%s4817_s28] sm:$0x3] %v3700_v2  ;;  %v4386_v3 = vpop.f32.mrb[33].mxu1 }
 0x57a   : > { %v3703_v4 = vpop.f32.mrb[34].mxu1 }
 0x57b   : > { %v4387_v5 = vpop.f32.mrb[35].mxu1 }
 0x57c PF: > { %s20_s19 = sadd.s32 1, %s4670_s19   ;;  %s5766_s21 = sld [smem:[#allocation4_spill]] }
 0x57d   : > { %p17_p13 = scmp.ge.s32.totalorder %s20_s19, 6   ;;  %s5767_s24 = sld [smem:[#allocation5_spill]] }
 0x57e   : > { %s5768_s13 = smov %s4650_s14  ;;  %s5769_s14 = smov %s4782_s26 }
 0x57f   : > { %s5770_s15 = smov %s4662_s17  ;;  %s5771_s16 = smov %s4666_s18 }
 0x580   :  { %19 = sbr.rel (!%p17_p13) target bundleno = 4 (0x4), region = 144 }
 0x582   : > { %s5772_s17 = smov %s5766_s21 }
 0x583   : > { %s5773_s18 = smov %s5767_s24 }

</bundles_post_ra>
